<compile_context>
chip_gen: v5e
topology: v5e:2x2
jax: 0.10.0
libtpu: 0.0.40
codegen_flags: <defaults>
</compile_context>

<pallas_src>
import math
import numpy as np
import jax
import jax.numpy as jnp
from jax.experimental import pallas as pl
from jax.experimental.pallas import tpu as pltpu

# ---- small config consistent with SpectralTransNet's forward ----------------
B = 2            # batch
PATCH = 4        # patch_size  -> image_size = PATCH*PATCH
SPECTRAL = 8     # spectral_size (sequence length of the transformer)
IMG = PATCH * PATCH
DIM = 32         # embedding dim
DEPTH = 2        # transformer depth
HEADS = 4
DIM_HEADS = 8
INNER = HEADS * DIM_HEADS
MLP_DIM = 16
TIME_DIM = 32    # time_emb_dim
EPS = 1e-5       # nn.LayerNorm default eps
SCALE = DIM_HEADS ** -0.5
_INV_SQRT2 = 0.7071067811865476
BS = B * SPECTRAL               # fused row count (16)
G = HEADS * B                   # batched attention groups (8)

# ---- packed-slab index layout ------------------------------------------------
# weight slab: (NW, DIM, DIM), each block zero-padded to (32, 32)
W_EMB = 0
W_DEPTH0 = 1                     # + d*6 + {0:q, 1:k, 2:v, 3:out, 4:m1, 5:m2}
W_PER_DEPTH = 6
W_HEAD = W_DEPTH0 + DEPTH * W_PER_DEPTH
NW = W_HEAD + 1                  # 14

# vector slab: (NV, BS, DIM), each block pre-broadcast to (16, 32)
V_EMB = 0                        # pos (tiled over batch) + bemb
V_PER_DEPTH = 7                  # ln1g, ln1b, bout, ln2g, ln2b, bm1, bm2
V_DEPTH0 = 1
V_LNHG = V_DEPTH0 + DEPTH * V_PER_DEPTH
V_LNHB = V_LNHG + 1
V_BH = V_LNHB + 1
NV = V_BH + 1                    # 18


# ---- in-kernel helpers -------------------------------------------------------
def _layernorm(x, g, b):
    # One-pass statistics: mean and mean(x^2) are independent XLU reductions.
    mu = jnp.mean(x, axis=-1, keepdims=True)
    m2 = jnp.mean(x * x, axis=-1, keepdims=True)
    var = m2 - mu * mu
    return (x - mu) * jax.lax.rsqrt(var + EPS) * g + b


def _gelu(x):  # exact (erf-based) GELU, matches nn.GELU() default
    return 0.5 * x * (1.0 + jax.lax.erf(x * _INV_SQRT2))


# ---- Pallas kernel: entire batch in one invocation ---------------------------
def spectral_trans_kernel(x_ref, w_ref, v_ref, o_ref):
    f32 = jnp.float32

    # x arrives as (BS, DIM) with the time scalar already added and lanes IMG..DIM-1 zero.
    x = x_ref[...]

    # spectral_patch_embedding + (positional embedding + bias) in one padded matmul + add
    x = jnp.dot(x, w_ref[W_EMB], preferred_element_type=f32) + v_ref[V_EMB]   # (BS, DIM)

    # Per-head lane-band masks, built once (VPU-only; lanes [h*8, (h+1)*8) == 1).
    lane = jax.lax.broadcasted_iota(jnp.int32, (BS, DIM), 1)
    band = [((lane >= hh * DIM_HEADS) & (lane < (hh + 1) * DIM_HEADS)).astype(f32)
            for hh in range(HEADS)]

    # Transformer: depth x [Residual(LN->Attention), Residual(LN->MLP)]
    for d in range(DEPTH):
        wb = W_DEPTH0 + d * W_PER_DEPTH
        vb = V_DEPTH0 + d * V_PER_DEPTH

        # ---- attention block (all heads batched through one softmax) ----
        h = _layernorm(x, v_ref[vb + 0], v_ref[vb + 1])
        q = jnp.dot(h, w_ref[wb + 0], preferred_element_type=f32)   # (BS, DIM) heads in bands
        k = jnp.dot(h, w_ref[wb + 1], preferred_element_type=f32)
        v = jnp.dot(h, w_ref[wb + 2], preferred_element_type=f32)

        q3 = q.reshape(B, SPECTRAL, DIM)
        # Leading-dim concat only (no lane relayout): group g = head*B + batch.
        qg = jnp.concatenate([q3] * HEADS, axis=0)                                 # (G,S,DIM)
        kg = jnp.concatenate(
            [(k * band[hh]).reshape(B, SPECTRAL, DIM) for hh in range(HEADS)], axis=0)
        vg = jnp.concatenate(
            [(v * band[hh]).reshape(B, SPECTRAL, DIM) for hh in range(HEADS)], axis=0)

        # Band-masked k means the 32-lane contraction already isolates head h.
        dots = jnp.einsum('gqd,gkd->gqk', qg, kg,
                          preferred_element_type=f32) * SCALE                      # (G,S,S)
        dots = dots - jnp.max(dots, axis=-1, keepdims=True)
        e = jnp.exp(dots)
        attn = e * pl.reciprocal(jnp.sum(e, axis=-1, keepdims=True), approx=True)
        og = jnp.einsum('gqk,gkd->gqd', attn, vg,
                        preferred_element_type=f32)                                # (G,S,DIM)

        # Head h's AV result is nonzero only in its own lane band (v was masked), so summing
        # over heads reproduces rearrange('b h n d -> b n (h d)').
        combined = og[0:B]
        for hh in range(1, HEADS):
            combined = combined + og[hh * B:(hh + 1) * B]                          # (B,S,DIM)

        attn_out = jnp.dot(combined.reshape(BS, DIM), w_ref[wb + 3],
                           preferred_element_type=f32) + v_ref[vb + 2]
        x = x + attn_out

        # ---- MLP block ----
        h = _layernorm(x, v_ref[vb + 3], v_ref[vb + 4])
        h = _gelu(jnp.dot(h, w_ref[wb + 4], preferred_element_type=f32) + v_ref[vb + 5])
        h = jnp.dot(h, w_ref[wb + 5], preferred_element_type=f32) + v_ref[vb + 6]
        x = x + h

    # mlp_head: LayerNorm -> Linear(DIM -> IMG)
    h = _layernorm(x, v_ref[V_LNHG], v_ref[V_LNHB])
    out = jnp.dot(h, w_ref[W_HEAD], preferred_element_type=f32) + v_ref[V_BH]  # (BS, DIM)
    # only the first IMG lanes are real (wh/bh were zero-padded); IMG=16 < 128 lanes is a
    # masked store, but the whole output is 1 KiB so this epilogue cost is negligible.
    o_ref[...] = out[:, :IMG]


# ---- parameter packing (2 slabs, done ONCE at init, outside the call path) ----
def _pad_block(w):
    r, c = w.shape
    return jnp.pad(w.astype(jnp.float32), ((0, DIM - r), (0, DIM - c)))


def _vec_block(v):
    v = jnp.asarray(v, jnp.float32).reshape(1, -1)
    v = jnp.pad(v, ((0, 0), (0, DIM - v.shape[1])))
    return jnp.broadcast_to(v, (BS, DIM))


def pack_params(params):
    # --- weight slab (14 blocks) ---
    blocks = [_pad_block(params["wemb"])]                               # W_EMB
    for d in range(DEPTH):
        wqkv = params["wqkv"][d]                                        # (DIM, 3*INNER)
        blocks.append(_pad_block(wqkv[:, 0:INNER]))                     # Wq (heads in bands)
        blocks.append(_pad_block(wqkv[:, INNER:2 * INNER]))             # Wk
        blocks.append(_pad_block(wqkv[:, 2 * INNER:3 * INNER]))         # Wv
        blocks.append(_pad_block(params["wout"][d]))                    # Wout (un-split)
        blocks.append(_pad_block(params["wm1"][d]))                     # (32,16)->(32,32)
        blocks.append(_pad_block(params["wm2"][d]))                     # (16,32)->(32,32)
    blocks.append(_pad_block(params["wh"]))                             # W_HEAD
    wblk = jnp.stack(blocks, axis=0)                                    # (NW, 32, 32)
    assert wblk.shape == (NW, DIM, DIM)

    # --- vector slab ---
    vecs = [jnp.tile(params["pos"].astype(jnp.float32), (B, 1))
            + params["bemb"].astype(jnp.float32)]                       # V_EMB (BS, DIM)
    for d in range(DEPTH):
        for name in ("ln1g", "ln1b", "bout", "ln2g", "ln2b", "bm1", "bm2"):
            vecs.append(_vec_block(params[name][d]))
    vecs.append(_vec_block(params["lnhg"]))
    vecs.append(_vec_block(params["lnhb"]))
    vecs.append(_vec_block(params["bh"]))
    vblk = jnp.stack(vecs, axis=0)                                      # (NV, 16, 32)
    assert vblk.shape == (NV, BS, DIM)
    return wblk, vblk


# ---- wrapper (jitted; slabs are precomputed inputs) ----------------------------
def _sinusoidal(emb):
    half = TIME_DIM // 2
    freqs = jnp.exp(jnp.arange(half, dtype=jnp.float32)
                    * -(math.log(10000.0) / (half - 1)))
    ang = emb.astype(jnp.float32)[:, None] * freqs[None, :]
    return jnp.concatenate([jnp.sin(ang), jnp.cos(ang)], axis=-1)       # (B, TIME_DIM)


@jax.jit
def spectral_transnet_forward(x5, emb, wblk, vblk, tparams):
    """x5: (B, 1, S, W, H) float32; emb: (B,) float32 -> (B, 1, S, W, H)."""
    b, c, s, w, h = x5.shape
    img = w * h

    # Tiny 2-layer time MLP evaluated wrapper-side; its scalar output is folded into x.
    ts = _sinusoidal(emb)
    t = jnp.maximum(ts @ tparams["wt1"] + tparams["bt1"], 0.0)
    t = jnp.maximum(t @ tparams["wt2"] + tparams["bt2"], 0.0)           # (B, 1)
    x = x5.reshape(b, s, img).astype(jnp.float32) + t[:, :, None]
    x_in = jnp.pad(x.reshape(b * s, img), ((0, 0), (0, DIM - img)))     # (BS, DIM)

    out = pl.pallas_call(
        spectral_trans_kernel,
        out_shape=jax.ShapeDtypeStruct((b * s, img), jnp.float32),
        grid_spec=pltpu.PrefetchScalarGridSpec(
            num_scalar_prefetch=0,
            grid=(1,),
            in_specs=[
                pl.BlockSpec((b * s, DIM), lambda i: (0, 0)),
                pl.BlockSpec((NW, DIM, DIM), lambda i: (0, 0, 0)),
                pl.BlockSpec((NV, b * s, DIM), lambda i: (0, 0, 0)),
            ],
            out_specs=pl.BlockSpec((b * s, img), lambda i: (0, 0)),
        ),
        compiler_params=pltpu.CompilerParams(dimension_semantics=("arbitrary",)),
    )(x_in, wblk, vblk)
    return out.reshape(b, 1, s, w, h)


# ---- deterministic synthetic parameters ---------------------------------------
def make_params(key):
    keys = jax.random.split(key, 24)
    it = iter(range(24))

    def nrm(shape, scale=0.1):
        return scale * jax.random.normal(keys[next(it)], shape, dtype=jnp.float32)

    p = {}
    p["wt1"] = nrm((TIME_DIM, TIME_DIM)); p["bt1"] = nrm((1, TIME_DIM), 0.02)
    p["wt2"] = nrm((TIME_DIM, 1));        p["bt2"] = nrm((1, 1), 0.02)
    p["wemb"] = nrm((IMG, DIM));          p["bemb"] = nrm((1, DIM), 0.02)
    p["pos"] = nrm((SPECTRAL, DIM))
    p["ln1g"] = jnp.ones((DEPTH, 1, DIM), jnp.float32)
    p["ln1b"] = jnp.zeros((DEPTH, 1, DIM), jnp.float32)
    p["wqkv"] = nrm((DEPTH, DIM, 3 * INNER))
    p["wout"] = nrm((DEPTH, INNER, DIM)); p["bout"] = nrm((DEPTH, 1, DIM), 0.02)
    p["ln2g"] = jnp.ones((DEPTH, 1, DIM), jnp.float32)
    p["ln2b"] = jnp.zeros((DEPTH, 1, DIM), jnp.float32)
    p["wm1"] = nrm((DEPTH, DIM, MLP_DIM)); p["bm1"] = nrm((DEPTH, 1, MLP_DIM), 0.02)
    p["wm2"] = nrm((DEPTH, MLP_DIM, DIM)); p["bm2"] = nrm((DEPTH, 1, DIM), 0.02)
    p["lnhg"] = jnp.ones((1, DIM), jnp.float32)
    p["lnhb"] = jnp.zeros((1, DIM), jnp.float32)
    p["wh"] = nrm((DIM, IMG)); p["bh"] = nrm((1, IMG), 0.02)
    return p


# ---- pure-JAX reference (mirrors the PyTorch forward) --------------------------
def reference_forward(x5, emb, params):
    b, c, s, w, h = x5.shape
    x = x5.reshape(b, s, w * h).astype(jnp.float32)
    ts = _sinusoidal(emb)
    t = jnp.maximum(ts @ params["wt1"] + params["bt1"], 0.0)
    t = jnp.maximum(t @ params["wt2"] + params["bt2"], 0.0)          # (B, 1)
    x = x + t[:, :, None]

    x = x @ params["wemb"] + params["bemb"]
    x = x + params["pos"][None]

    def ln(z, g, bb):
        mu = jnp.mean(z, -1, keepdims=True)
        var = jnp.mean((z - mu) ** 2, -1, keepdims=True)
        return (z - mu) * jax.lax.rsqrt(var + EPS) * g + bb

    for d in range(DEPTH):
        hh = ln(x, params["ln1g"][d], params["ln1b"][d])
        qkv = hh @ params["wqkv"][d]
        q, k, v = jnp.split(qkv, 3, axis=-1)
        def hv(tt):
            return tt.reshape(b, s, HEADS, DIM_HEADS).transpose(0, 2, 1, 3)
        q, k, v = map(hv, (q, k, v))
        dots = jnp.einsum("bhid,bhjd->bhij", q, k) * SCALE
        attn = jax.nn.softmax(dots, axis=-1)
        o = jnp.einsum("bhij,bhjd->bhid", attn, v)
        o = o.transpose(0, 2, 1, 3).reshape(b, s, INNER)
        x = x + (o @ params["wout"][d] + params["bout"][d])

        hh = ln(x, params["ln2g"][d], params["ln2b"][d])
        hh = hh @ params["wm1"][d] + params["bm1"][d]
        hh = 0.5 * hh * (1.0 + jax.lax.erf(hh * _INV_SQRT2))
        hh = hh @ params["wm2"][d] + params["bm2"][d]
        x = x + hh

    hh = ln(x, params["lnhg"], params["lnhb"])
    out = hh @ params["wh"] + params["bh"]
    return out.reshape(b, 1, s, w, h)


if __name__ == "__main__":
    key = jax.random.PRNGKey(0)
    kx, ke, kp = jax.random.split(key, 3)
    x = jax.random.normal(kx, (B, 1, SPECTRAL, PATCH, PATCH), dtype=jnp.float32)
    emb = jax.random.uniform(ke, (B,), dtype=jnp.float32, minval=0.0, maxval=10.0)
    params = make_params(kp)

    # Hoisted one-time parameter packing (not on the per-call path).
    wblk, vblk = pack_params(params)
    wblk = jax.block_until_ready(wblk)
    vblk = jax.block_until_ready(vblk)
    tparams = {k: params[k] for k in ("wt1", "bt1", "wt2", "bt2")}

    out = spectral_transnet_forward(x, emb, wblk, vblk, tparams)
    out = jax.block_until_ready(out)
    assert out.shape == (B, 1, SPECTRAL, PATCH, PATCH)

    ref = reference_forward(x, emb, params)
    np.testing.assert_allclose(np.asarray(out), np.asarray(ref), rtol=2e-3, atol=2e-3)

    print("KERNEL_OK")
</pallas_src>

<mosaic_0001>
module attributes {stable_mosaic.version = 11 : i64} {
  func.func @spectral_trans_kernel(%arg0: i32, %arg1: memref<16x32xf32, #tpu.memory_space<vmem>>, %arg2: memref<14x32x32xf32, #tpu.memory_space<vmem>>, %arg3: memref<18x16x32xf32, #tpu.memory_space<vmem>>, %arg4: memref<16x16xf32, #tpu.memory_space<vmem>>) attributes {dimension_semantics = [#tpu.dimension_semantics<arbitrary>], iteration_bounds = array<i64: 1>, scalar_prefetch = 0 : i64, scratch_operands = 0 : i64, tpu.core_type = #tpu.core_type<tc>, window_params = [{pipeline_mode = #tpu.pipeline_mode<synchronous>, transform_indices = @transform_0, window_bounds = array<i64: 16, 32>}, {pipeline_mode = #tpu.pipeline_mode<synchronous>, transform_indices = @transform_1, window_bounds = array<i64: 14, 32, 32>}, {pipeline_mode = #tpu.pipeline_mode<synchronous>, transform_indices = @transform_2, window_bounds = array<i64: 18, 16, 32>}, {pipeline_mode = #tpu.pipeline_mode<synchronous>, transform_indices = @transform_3, window_bounds = array<i64: 16, 16>}]} {
    %c0 = arith.constant 0 : index
    %c0_0 = arith.constant 0 : index
    %0 = vector.load %arg1[%c0, %c0_0] : memref<16x32xf32, #tpu.memory_space<vmem>>, vector<16x32xf32>
    %c0_1 = arith.constant 0 : index
    %c0_2 = arith.constant 0 : index
    %c0_3 = arith.constant 0 : index
    %1 = vector.load %arg2[%c0_1, %c0_2, %c0_3] : memref<14x32x32xf32, #tpu.memory_space<vmem>>, vector<1x32x32xf32>
    %2 = vector.shape_cast %1 : vector<1x32x32xf32> to vector<32x32xf32>
    %cst = arith.constant dense<0.000000e+00> : vector<16x32xf32>
    %3 = tpu.matmul %0, %2, %cst {dimension_numbers = #tpu.dot_dimension_numbers<[1], [0], [0], [1], [0, 0, 1, 1], [], []>} : vector<16x32xf32>, vector<32x32xf32>, vector<16x32xf32> -> vector<16x32xf32>
    %c0_4 = arith.constant 0 : index
    %c0_5 = arith.constant 0 : index
    %c0_6 = arith.constant 0 : index
    %4 = vector.load %arg3[%c0_4, %c0_5, %c0_6] : memref<18x16x32xf32, #tpu.memory_space<vmem>>, vector<1x16x32xf32>
    %5 = vector.shape_cast %4 : vector<1x16x32xf32> to vector<16x32xf32>
    %6 = arith.addf %3, %5 : vector<16x32xf32>
    %7 = tpu.iota {dimensions = array<i32: 1>} : vector<16x32xi32>
    %c0_i32 = arith.constant 0 : i32
    %8 = vector.broadcast %c0_i32 : i32 to vector<16x32xi32>
    %9 = arith.cmpi sge, %7, %8 : vector<16x32xi32>
    %c8_i32 = arith.constant 8 : i32
    %10 = vector.broadcast %c8_i32 : i32 to vector<16x32xi32>
    %11 = arith.cmpi slt, %7, %10 : vector<16x32xi32>
    %12 = arith.andi %9, %11 : vector<16x32xi1>
    %13 = arith.extui %12 : vector<16x32xi1> to vector<16x32xi32>
    %14 = arith.sitofp %13 : vector<16x32xi32> to vector<16x32xf32>
    %c8_i32_7 = arith.constant 8 : i32
    %15 = vector.broadcast %c8_i32_7 : i32 to vector<16x32xi32>
    %16 = arith.cmpi sge, %7, %15 : vector<16x32xi32>
    %c16_i32 = arith.constant 16 : i32
    %17 = vector.broadcast %c16_i32 : i32 to vector<16x32xi32>
    %18 = arith.cmpi slt, %7, %17 : vector<16x32xi32>
    %19 = arith.andi %16, %18 : vector<16x32xi1>
    %20 = arith.extui %19 : vector<16x32xi1> to vector<16x32xi32>
    %21 = arith.sitofp %20 : vector<16x32xi32> to vector<16x32xf32>
    %c16_i32_8 = arith.constant 16 : i32
    %22 = vector.broadcast %c16_i32_8 : i32 to vector<16x32xi32>
    %23 = arith.cmpi sge, %7, %22 : vector<16x32xi32>
    %c24_i32 = arith.constant 24 : i32
    %24 = vector.broadcast %c24_i32 : i32 to vector<16x32xi32>
    %25 = arith.cmpi slt, %7, %24 : vector<16x32xi32>
    %26 = arith.andi %23, %25 : vector<16x32xi1>
    %27 = arith.extui %26 : vector<16x32xi1> to vector<16x32xi32>
    %28 = arith.sitofp %27 : vector<16x32xi32> to vector<16x32xf32>
    %c24_i32_9 = arith.constant 24 : i32
    %29 = vector.broadcast %c24_i32_9 : i32 to vector<16x32xi32>
    %30 = arith.cmpi sge, %7, %29 : vector<16x32xi32>
    %c32_i32 = arith.constant 32 : i32
    %31 = vector.broadcast %c32_i32 : i32 to vector<16x32xi32>
    %32 = arith.cmpi slt, %7, %31 : vector<16x32xi32>
    %33 = arith.andi %30, %32 : vector<16x32xi1>
    %34 = arith.extui %33 : vector<16x32xi1> to vector<16x32xi32>
    %35 = arith.sitofp %34 : vector<16x32xi32> to vector<16x32xf32>
    %c1 = arith.constant 1 : index
    %c0_10 = arith.constant 0 : index
    %c0_11 = arith.constant 0 : index
    %36 = vector.load %arg3[%c1, %c0_10, %c0_11] : memref<18x16x32xf32, #tpu.memory_space<vmem>>, vector<1x16x32xf32>
    %37 = vector.shape_cast %36 : vector<1x16x32xf32> to vector<16x32xf32>
    %c2 = arith.constant 2 : index
    %c0_12 = arith.constant 0 : index
    %c0_13 = arith.constant 0 : index
    %38 = vector.load %arg3[%c2, %c0_12, %c0_13] : memref<18x16x32xf32, #tpu.memory_space<vmem>>, vector<1x16x32xf32>
    %39 = vector.shape_cast %38 : vector<1x16x32xf32> to vector<16x32xf32>
    %cst_14 = arith.constant dense<0.000000e+00> : vector<16xf32>
    %40 = vector.multi_reduction <add>, %6, %cst_14 [1] : vector<16x32xf32> to vector<16xf32>
    %41 = vector.shape_cast %40 : vector<16xf32> to vector<16x1xf32>
    %cst_15 = arith.constant 3.200000e+01 : f32
    %42 = vector.broadcast %cst_15 : f32 to vector<16x1xf32>
    %43 = arith.divf %41, %42 : vector<16x1xf32>
    %44 = arith.mulf %6, %6 : vector<16x32xf32>
    %cst_16 = arith.constant dense<0.000000e+00> : vector<16xf32>
    %45 = vector.multi_reduction <add>, %44, %cst_16 [1] : vector<16x32xf32> to vector<16xf32>
    %46 = vector.shape_cast %45 : vector<16xf32> to vector<16x1xf32>
    %cst_17 = arith.constant 3.200000e+01 : f32
    %47 = vector.broadcast %cst_17 : f32 to vector<16x1xf32>
    %48 = arith.divf %46, %47 : vector<16x1xf32>
    %49 = arith.mulf %43, %43 : vector<16x1xf32>
    %50 = arith.subf %48, %49 : vector<16x1xf32>
    %51 = vector.broadcast %43 : vector<16x1xf32> to vector<16x32xf32>
    %52 = arith.subf %6, %51 : vector<16x32xf32>
    %cst_18 = arith.constant 9.99999974E-6 : f32
    %53 = vector.broadcast %cst_18 : f32 to vector<16x1xf32>
    %54 = arith.addf %50, %53 : vector<16x1xf32>
    %55 = math.rsqrt %54 : vector<16x1xf32>
    %56 = vector.broadcast %55 : vector<16x1xf32> to vector<16x32xf32>
    %57 = arith.mulf %52, %56 : vector<16x32xf32>
    %58 = arith.mulf %57, %37 : vector<16x32xf32>
    %59 = arith.addf %58, %39 : vector<16x32xf32>
    %c1_19 = arith.constant 1 : index
    %c0_20 = arith.constant 0 : index
    %c0_21 = arith.constant 0 : index
    %60 = vector.load %arg2[%c1_19, %c0_20, %c0_21] : memref<14x32x32xf32, #tpu.memory_space<vmem>>, vector<1x32x32xf32>
    %61 = vector.shape_cast %60 : vector<1x32x32xf32> to vector<32x32xf32>
    %cst_22 = arith.constant dense<0.000000e+00> : vector<16x32xf32>
    %62 = tpu.matmul %59, %61, %cst_22 {dimension_numbers = #tpu.dot_dimension_numbers<[1], [0], [0], [1], [0, 0, 1, 1], [], []>} : vector<16x32xf32>, vector<32x32xf32>, vector<16x32xf32> -> vector<16x32xf32>
    %c2_23 = arith.constant 2 : index
    %c0_24 = arith.constant 0 : index
    %c0_25 = arith.constant 0 : index
    %63 = vector.load %arg2[%c2_23, %c0_24, %c0_25] : memref<14x32x32xf32, #tpu.memory_space<vmem>>, vector<1x32x32xf32>
    %64 = vector.shape_cast %63 : vector<1x32x32xf32> to vector<32x32xf32>
    %cst_26 = arith.constant dense<0.000000e+00> : vector<16x32xf32>
    %65 = tpu.matmul %59, %64, %cst_26 {dimension_numbers = #tpu.dot_dimension_numbers<[1], [0], [0], [1], [0, 0, 1, 1], [], []>} : vector<16x32xf32>, vector<32x32xf32>, vector<16x32xf32> -> vector<16x32xf32>
    %c3 = arith.constant 3 : index
    %c0_27 = arith.constant 0 : index
    %c0_28 = arith.constant 0 : index
    %66 = vector.load %arg2[%c3, %c0_27, %c0_28] : memref<14x32x32xf32, #tpu.memory_space<vmem>>, vector<1x32x32xf32>
    %67 = vector.shape_cast %66 : vector<1x32x32xf32> to vector<32x32xf32>
    %cst_29 = arith.constant dense<0.000000e+00> : vector<16x32xf32>
    %68 = tpu.matmul %59, %67, %cst_29 {dimension_numbers = #tpu.dot_dimension_numbers<[1], [0], [0], [1], [0, 0, 1, 1], [], []>} : vector<16x32xf32>, vector<32x32xf32>, vector<16x32xf32> -> vector<16x32xf32>
    %69 = vector.shape_cast %62 : vector<16x32xf32> to vector<2x8x32xf32>
    %70 = tpu.concatenate %69, %69, %69, %69 in 0 : vector<2x8x32xf32>, vector<2x8x32xf32>, vector<2x8x32xf32>, vector<2x8x32xf32> -> vector<8x8x32xf32>
    %71 = arith.mulf %65, %14 : vector<16x32xf32>
    %72 = vector.shape_cast %71 : vector<16x32xf32> to vector<2x8x32xf32>
    %73 = arith.mulf %65, %21 : vector<16x32xf32>
    %74 = vector.shape_cast %73 : vector<16x32xf32> to vector<2x8x32xf32>
    %75 = arith.mulf %65, %28 : vector<16x32xf32>
    %76 = vector.shape_cast %75 : vector<16x32xf32> to vector<2x8x32xf32>
    %77 = arith.mulf %65, %35 : vector<16x32xf32>
    %78 = vector.shape_cast %77 : vector<16x32xf32> to vector<2x8x32xf32>
    %79 = tpu.concatenate %72, %74, %76, %78 in 0 : vector<2x8x32xf32>, vector<2x8x32xf32>, vector<2x8x32xf32>, vector<2x8x32xf32> -> vector<8x8x32xf32>
    %80 = arith.mulf %68, %14 : vector<16x32xf32>
    %81 = vector.shape_cast %80 : vector<16x32xf32> to vector<2x8x32xf32>
    %82 = arith.mulf %68, %21 : vector<16x32xf32>
    %83 = vector.shape_cast %82 : vector<16x32xf32> to vector<2x8x32xf32>
    %84 = arith.mulf %68, %28 : vector<16x32xf32>
    %85 = vector.shape_cast %84 : vector<16x32xf32> to vector<2x8x32xf32>
    %86 = arith.mulf %68, %35 : vector<16x32xf32>
    %87 = vector.shape_cast %86 : vector<16x32xf32> to vector<2x8x32xf32>
    %88 = tpu.concatenate %81, %83, %85, %87 in 0 : vector<2x8x32xf32>, vector<2x8x32xf32>, vector<2x8x32xf32>, vector<2x8x32xf32> -> vector<8x8x32xf32>
    "tpu.trace_start"() <{level = 10 : i32, message = "gqd,gkd->gqk"}> : () -> ()
    %cst_30 = arith.constant dense<0.000000e+00> : vector<8x8x8xf32>
    %89 = tpu.matmul %70, %79, %cst_30 {dimension_numbers = #tpu.dot_dimension_numbers<[2], [2], [1], [1], [0, 0, 0, 1, 1, 1], [0], [0]>} : vector<8x8x32xf32>, vector<8x8x32xf32>, vector<8x8x8xf32> -> vector<8x8x8xf32>
    "tpu.trace_stop"() : () -> ()
    %cst_31 = arith.constant 0.353553385 : f32
    %90 = vector.broadcast %cst_31 : f32 to vector<8x8x8xf32>
    %91 = arith.mulf %89, %90 : vector<8x8x8xf32>
    %cst_32 = arith.constant dense<0xFF800000> : vector<8x8xf32>
    %92 = vector.multi_reduction <maximumf>, %91, %cst_32 [2] : vector<8x8x8xf32> to vector<8x8xf32>
    %93 = vector.shape_cast %92 : vector<8x8xf32> to vector<8x8x1xf32>
    %94 = vector.broadcast %93 : vector<8x8x1xf32> to vector<8x8x8xf32>
    %95 = arith.subf %91, %94 : vector<8x8x8xf32>
    %96 = math.exp %95 : vector<8x8x8xf32>
    %cst_33 = arith.constant dense<0.000000e+00> : vector<8x8xf32>
    %97 = vector.multi_reduction <add>, %96, %cst_33 [2] : vector<8x8x8xf32> to vector<8x8xf32>
    %98 = vector.shape_cast %97 : vector<8x8xf32> to vector<8x8x1xf32>
    %99 = tpu.reciprocal %98 {approx = true} : vector<8x8x1xf32> -> vector<8x8x1xf32>
    %100 = vector.broadcast %99 : vector<8x8x1xf32> to vector<8x8x8xf32>
    %101 = arith.mulf %96, %100 : vector<8x8x8xf32>
    "tpu.trace_start"() <{level = 10 : i32, message = "gqk,gkd->gqd"}> : () -> ()
    %cst_34 = arith.constant dense<0.000000e+00> : vector<8x8x32xf32>
    %102 = tpu.matmul %101, %88, %cst_34 {dimension_numbers = #tpu.dot_dimension_numbers<[2], [1], [1], [2], [0, 0, 0, 1, 1, 2], [0], [0]>} : vector<8x8x8xf32>, vector<8x8x32xf32>, vector<8x8x32xf32> -> vector<8x8x32xf32>
    "tpu.trace_stop"() : () -> ()
    %103 = vector.extract_strided_slice %102 {offsets = [0, 0, 0], sizes = [2, 8, 32], strides = [1, 1, 1]} : vector<8x8x32xf32> to vector<2x8x32xf32>
    %104 = vector.extract_strided_slice %102 {offsets = [2, 0, 0], sizes = [2, 8, 32], strides = [1, 1, 1]} : vector<8x8x32xf32> to vector<2x8x32xf32>
    %105 = arith.addf %103, %104 : vector<2x8x32xf32>
    %106 = vector.extract_strided_slice %102 {offsets = [4, 0, 0], sizes = [2, 8, 32], strides = [1, 1, 1]} : vector<8x8x32xf32> to vector<2x8x32xf32>
    %107 = arith.addf %105, %106 : vector<2x8x32xf32>
    %108 = vector.extract_strided_slice %102 {offsets = [6, 0, 0], sizes = [2, 8, 32], strides = [1, 1, 1]} : vector<8x8x32xf32> to vector<2x8x32xf32>
    %109 = arith.addf %107, %108 : vector<2x8x32xf32>
    %110 = vector.shape_cast %109 : vector<2x8x32xf32> to vector<16x32xf32>
    %c4 = arith.constant 4 : index
    %c0_35 = arith.constant 0 : index
    %c0_36 = arith.constant 0 : index
    %111 = vector.load %arg2[%c4, %c0_35, %c0_36] : memref<14x32x32xf32, #tpu.memory_space<vmem>>, vector<1x32x32xf32>
    %112 = vector.shape_cast %111 : vector<1x32x32xf32> to vector<32x32xf32>
    %cst_37 = arith.constant dense<0.000000e+00> : vector<16x32xf32>
    %113 = tpu.matmul %110, %112, %cst_37 {dimension_numbers = #tpu.dot_dimension_numbers<[1], [0], [0], [1], [0, 0, 1, 1], [], []>} : vector<16x32xf32>, vector<32x32xf32>, vector<16x32xf32> -> vector<16x32xf32>
    %c3_38 = arith.constant 3 : index
    %c0_39 = arith.constant 0 : index
    %c0_40 = arith.constant 0 : index
    %114 = vector.load %arg3[%c3_38, %c0_39, %c0_40] : memref<18x16x32xf32, #tpu.memory_space<vmem>>, vector<1x16x32xf32>
    %115 = vector.shape_cast %114 : vector<1x16x32xf32> to vector<16x32xf32>
    %116 = arith.addf %113, %115 : vector<16x32xf32>
    %117 = arith.addf %6, %116 : vector<16x32xf32>
    %c4_41 = arith.constant 4 : index
    %c0_42 = arith.constant 0 : index
    %c0_43 = arith.constant 0 : index
    %118 = vector.load %arg3[%c4_41, %c0_42, %c0_43] : memref<18x16x32xf32, #tpu.memory_space<vmem>>, vector<1x16x32xf32>
    %119 = vector.shape_cast %118 : vector<1x16x32xf32> to vector<16x32xf32>
    %c5 = arith.constant 5 : index
    %c0_44 = arith.constant 0 : index
    %c0_45 = arith.constant 0 : index
    %120 = vector.load %arg3[%c5, %c0_44, %c0_45] : memref<18x16x32xf32, #tpu.memory_space<vmem>>, vector<1x16x32xf32>
    %121 = vector.shape_cast %120 : vector<1x16x32xf32> to vector<16x32xf32>
    %cst_46 = arith.constant dense<0.000000e+00> : vector<16xf32>
    %122 = vector.multi_reduction <add>, %117, %cst_46 [1] : vector<16x32xf32> to vector<16xf32>
    %123 = vector.shape_cast %122 : vector<16xf32> to vector<16x1xf32>
    %cst_47 = arith.constant 3.200000e+01 : f32
    %124 = vector.broadcast %cst_47 : f32 to vector<16x1xf32>
    %125 = arith.divf %123, %124 : vector<16x1xf32>
    %126 = arith.mulf %117, %117 : vector<16x32xf32>
    %cst_48 = arith.constant dense<0.000000e+00> : vector<16xf32>
    %127 = vector.multi_reduction <add>, %126, %cst_48 [1] : vector<16x32xf32> to vector<16xf32>
    %128 = vector.shape_cast %127 : vector<16xf32> to vector<16x1xf32>
    %cst_49 = arith.constant 3.200000e+01 : f32
    %129 = vector.broadcast %cst_49 : f32 to vector<16x1xf32>
    %130 = arith.divf %128, %129 : vector<16x1xf32>
    %131 = arith.mulf %125, %125 : vector<16x1xf32>
    %132 = arith.subf %130, %131 : vector<16x1xf32>
    %133 = vector.broadcast %125 : vector<16x1xf32> to vector<16x32xf32>
    %134 = arith.subf %117, %133 : vector<16x32xf32>
    %cst_50 = arith.constant 9.99999974E-6 : f32
    %135 = vector.broadcast %cst_50 : f32 to vector<16x1xf32>
    %136 = arith.addf %132, %135 : vector<16x1xf32>
    %137 = math.rsqrt %136 : vector<16x1xf32>
    %138 = vector.broadcast %137 : vector<16x1xf32> to vector<16x32xf32>
    %139 = arith.mulf %134, %138 : vector<16x32xf32>
    %140 = arith.mulf %139, %119 : vector<16x32xf32>
    %141 = arith.addf %140, %121 : vector<16x32xf32>
    %c5_51 = arith.constant 5 : index
    %c0_52 = arith.constant 0 : index
    %c0_53 = arith.constant 0 : index
    %142 = vector.load %arg2[%c5_51, %c0_52, %c0_53] : memref<14x32x32xf32, #tpu.memory_space<vmem>>, vector<1x32x32xf32>
    %143 = vector.shape_cast %142 : vector<1x32x32xf32> to vector<32x32xf32>
    %cst_54 = arith.constant dense<0.000000e+00> : vector<16x32xf32>
    %144 = tpu.matmul %141, %143, %cst_54 {dimension_numbers = #tpu.dot_dimension_numbers<[1], [0], [0], [1], [0, 0, 1, 1], [], []>} : vector<16x32xf32>, vector<32x32xf32>, vector<16x32xf32> -> vector<16x32xf32>
    %c6 = arith.constant 6 : index
    %c0_55 = arith.constant 0 : index
    %c0_56 = arith.constant 0 : index
    %145 = vector.load %arg3[%c6, %c0_55, %c0_56] : memref<18x16x32xf32, #tpu.memory_space<vmem>>, vector<1x16x32xf32>
    %146 = vector.shape_cast %145 : vector<1x16x32xf32> to vector<16x32xf32>
    %147 = arith.addf %144, %146 : vector<16x32xf32>
    %cst_57 = arith.constant 5.000000e-01 : f32
    %148 = vector.broadcast %cst_57 : f32 to vector<16x32xf32>
    %149 = arith.mulf %148, %147 : vector<16x32xf32>
    %cst_58 = arith.constant 0.707106769 : f32
    %150 = vector.broadcast %cst_58 : f32 to vector<16x32xf32>
    %151 = arith.mulf %147, %150 : vector<16x32xf32>
    %152 = math.erf %151 : vector<16x32xf32>
    %cst_59 = arith.constant 1.000000e+00 : f32
    %153 = vector.broadcast %cst_59 : f32 to vector<16x32xf32>
    %154 = arith.addf %153, %152 : vector<16x32xf32>
    %155 = arith.mulf %149, %154 : vector<16x32xf32>
    %c6_60 = arith.constant 6 : index
    %c0_61 = arith.constant 0 : index
    %c0_62 = arith.constant 0 : index
    %156 = vector.load %arg2[%c6_60, %c0_61, %c0_62] : memref<14x32x32xf32, #tpu.memory_space<vmem>>, vector<1x32x32xf32>
    %157 = vector.shape_cast %156 : vector<1x32x32xf32> to vector<32x32xf32>
    %cst_63 = arith.constant dense<0.000000e+00> : vector<16x32xf32>
    %158 = tpu.matmul %155, %157, %cst_63 {dimension_numbers = #tpu.dot_dimension_numbers<[1], [0], [0], [1], [0, 0, 1, 1], [], []>} : vector<16x32xf32>, vector<32x32xf32>, vector<16x32xf32> -> vector<16x32xf32>
    %c7 = arith.constant 7 : index
    %c0_64 = arith.constant 0 : index
    %c0_65 = arith.constant 0 : index
    %159 = vector.load %arg3[%c7, %c0_64, %c0_65] : memref<18x16x32xf32, #tpu.memory_space<vmem>>, vector<1x16x32xf32>
    %160 = vector.shape_cast %159 : vector<1x16x32xf32> to vector<16x32xf32>
    %161 = arith.addf %158, %160 : vector<16x32xf32>
    %162 = arith.addf %117, %161 : vector<16x32xf32>
    %c8 = arith.constant 8 : index
    %c0_66 = arith.constant 0 : index
    %c0_67 = arith.constant 0 : index
    %163 = vector.load %arg3[%c8, %c0_66, %c0_67] : memref<18x16x32xf32, #tpu.memory_space<vmem>>, vector<1x16x32xf32>
    %164 = vector.shape_cast %163 : vector<1x16x32xf32> to vector<16x32xf32>
    %c9 = arith.constant 9 : index
    %c0_68 = arith.constant 0 : index
    %c0_69 = arith.constant 0 : index
    %165 = vector.load %arg3[%c9, %c0_68, %c0_69] : memref<18x16x32xf32, #tpu.memory_space<vmem>>, vector<1x16x32xf32>
    %166 = vector.shape_cast %165 : vector<1x16x32xf32> to vector<16x32xf32>
    %cst_70 = arith.constant dense<0.000000e+00> : vector<16xf32>
    %167 = vector.multi_reduction <add>, %162, %cst_70 [1] : vector<16x32xf32> to vector<16xf32>
    %168 = vector.shape_cast %167 : vector<16xf32> to vector<16x1xf32>
    %cst_71 = arith.constant 3.200000e+01 : f32
    %169 = vector.broadcast %cst_71 : f32 to vector<16x1xf32>
    %170 = arith.divf %168, %169 : vector<16x1xf32>
    %171 = arith.mulf %162, %162 : vector<16x32xf32>
    %cst_72 = arith.constant dense<0.000000e+00> : vector<16xf32>
    %172 = vector.multi_reduction <add>, %171, %cst_72 [1] : vector<16x32xf32> to vector<16xf32>
    %173 = vector.shape_cast %172 : vector<16xf32> to vector<16x1xf32>
    %cst_73 = arith.constant 3.200000e+01 : f32
    %174 = vector.broadcast %cst_73 : f32 to vector<16x1xf32>
    %175 = arith.divf %173, %174 : vector<16x1xf32>
    %176 = arith.mulf %170, %170 : vector<16x1xf32>
    %177 = arith.subf %175, %176 : vector<16x1xf32>
    %178 = vector.broadcast %170 : vector<16x1xf32> to vector<16x32xf32>
    %179 = arith.subf %162, %178 : vector<16x32xf32>
    %cst_74 = arith.constant 9.99999974E-6 : f32
    %180 = vector.broadcast %cst_74 : f32 to vector<16x1xf32>
    %181 = arith.addf %177, %180 : vector<16x1xf32>
    %182 = math.rsqrt %181 : vector<16x1xf32>
    %183 = vector.broadcast %182 : vector<16x1xf32> to vector<16x32xf32>
    %184 = arith.mulf %179, %183 : vector<16x32xf32>
    %185 = arith.mulf %184, %164 : vector<16x32xf32>
    %186 = arith.addf %185, %166 : vector<16x32xf32>
    %c7_75 = arith.constant 7 : index
    %c0_76 = arith.constant 0 : index
    %c0_77 = arith.constant 0 : index
    %187 = vector.load %arg2[%c7_75, %c0_76, %c0_77] : memref<14x32x32xf32, #tpu.memory_space<vmem>>, vector<1x32x32xf32>
    %188 = vector.shape_cast %187 : vector<1x32x32xf32> to vector<32x32xf32>
    %cst_78 = arith.constant dense<0.000000e+00> : vector<16x32xf32>
    %189 = tpu.matmul %186, %188, %cst_78 {dimension_numbers = #tpu.dot_dimension_numbers<[1], [0], [0], [1], [0, 0, 1, 1], [], []>} : vector<16x32xf32>, vector<32x32xf32>, vector<16x32xf32> -> vector<16x32xf32>
    %c8_79 = arith.constant 8 : index
    %c0_80 = arith.constant 0 : index
    %c0_81 = arith.constant 0 : index
    %190 = vector.load %arg2[%c8_79, %c0_80, %c0_81] : memref<14x32x32xf32, #tpu.memory_space<vmem>>, vector<1x32x32xf32>
    %191 = vector.shape_cast %190 : vector<1x32x32xf32> to vector<32x32xf32>
    %cst_82 = arith.constant dense<0.000000e+00> : vector<16x32xf32>
    %192 = tpu.matmul %186, %191, %cst_82 {dimension_numbers = #tpu.dot_dimension_numbers<[1], [0], [0], [1], [0, 0, 1, 1], [], []>} : vector<16x32xf32>, vector<32x32xf32>, vector<16x32xf32> -> vector<16x32xf32>
    %c9_83 = arith.constant 9 : index
    %c0_84 = arith.constant 0 : index
    %c0_85 = arith.constant 0 : index
    %193 = vector.load %arg2[%c9_83, %c0_84, %c0_85] : memref<14x32x32xf32, #tpu.memory_space<vmem>>, vector<1x32x32xf32>
    %194 = vector.shape_cast %193 : vector<1x32x32xf32> to vector<32x32xf32>
    %cst_86 = arith.constant dense<0.000000e+00> : vector<16x32xf32>
    %195 = tpu.matmul %186, %194, %cst_86 {dimension_numbers = #tpu.dot_dimension_numbers<[1], [0], [0], [1], [0, 0, 1, 1], [], []>} : vector<16x32xf32>, vector<32x32xf32>, vector<16x32xf32> -> vector<16x32xf32>
    %196 = vector.shape_cast %189 : vector<16x32xf32> to vector<2x8x32xf32>
    %197 = tpu.concatenate %196, %196, %196, %196 in 0 : vector<2x8x32xf32>, vector<2x8x32xf32>, vector<2x8x32xf32>, vector<2x8x32xf32> -> vector<8x8x32xf32>
    %198 = arith.mulf %192, %14 : vector<16x32xf32>
    %199 = vector.shape_cast %198 : vector<16x32xf32> to vector<2x8x32xf32>
    %200 = arith.mulf %192, %21 : vector<16x32xf32>
    %201 = vector.shape_cast %200 : vector<16x32xf32> to vector<2x8x32xf32>
    %202 = arith.mulf %192, %28 : vector<16x32xf32>
    %203 = vector.shape_cast %202 : vector<16x32xf32> to vector<2x8x32xf32>
    %204 = arith.mulf %192, %35 : vector<16x32xf32>
    %205 = vector.shape_cast %204 : vector<16x32xf32> to vector<2x8x32xf32>
    %206 = tpu.concatenate %199, %201, %203, %205 in 0 : vector<2x8x32xf32>, vector<2x8x32xf32>, vector<2x8x32xf32>, vector<2x8x32xf32> -> vector<8x8x32xf32>
    %207 = arith.mulf %195, %14 : vector<16x32xf32>
    %208 = vector.shape_cast %207 : vector<16x32xf32> to vector<2x8x32xf32>
    %209 = arith.mulf %195, %21 : vector<16x32xf32>
    %210 = vector.shape_cast %209 : vector<16x32xf32> to vector<2x8x32xf32>
    %211 = arith.mulf %195, %28 : vector<16x32xf32>
    %212 = vector.shape_cast %211 : vector<16x32xf32> to vector<2x8x32xf32>
    %213 = arith.mulf %195, %35 : vector<16x32xf32>
    %214 = vector.shape_cast %213 : vector<16x32xf32> to vector<2x8x32xf32>
    %215 = tpu.concatenate %208, %210, %212, %214 in 0 : vector<2x8x32xf32>, vector<2x8x32xf32>, vector<2x8x32xf32>, vector<2x8x32xf32> -> vector<8x8x32xf32>
    "tpu.trace_start"() <{level = 10 : i32, message = "gqd,gkd->gqk"}> : () -> ()
    %cst_87 = arith.constant dense<0.000000e+00> : vector<8x8x8xf32>
    %216 = tpu.matmul %197, %206, %cst_87 {dimension_numbers = #tpu.dot_dimension_numbers<[2], [2], [1], [1], [0, 0, 0, 1, 1, 1], [0], [0]>} : vector<8x8x32xf32>, vector<8x8x32xf32>, vector<8x8x8xf32> -> vector<8x8x8xf32>
    "tpu.trace_stop"() : () -> ()
    %cst_88 = arith.constant 0.353553385 : f32
    %217 = vector.broadcast %cst_88 : f32 to vector<8x8x8xf32>
    %218 = arith.mulf %216, %217 : vector<8x8x8xf32>
    %cst_89 = arith.constant dense<0xFF800000> : vector<8x8xf32>
    %219 = vector.multi_reduction <maximumf>, %218, %cst_89 [2] : vector<8x8x8xf32> to vector<8x8xf32>
    %220 = vector.shape_cast %219 : vector<8x8xf32> to vector<8x8x1xf32>
    %221 = vector.broadcast %220 : vector<8x8x1xf32> to vector<8x8x8xf32>
    %222 = arith.subf %218, %221 : vector<8x8x8xf32>
    %223 = math.exp %222 : vector<8x8x8xf32>
    %cst_90 = arith.constant dense<0.000000e+00> : vector<8x8xf32>
    %224 = vector.multi_reduction <add>, %223, %cst_90 [2] : vector<8x8x8xf32> to vector<8x8xf32>
    %225 = vector.shape_cast %224 : vector<8x8xf32> to vector<8x8x1xf32>
    %226 = tpu.reciprocal %225 {approx = true} : vector<8x8x1xf32> -> vector<8x8x1xf32>
    %227 = vector.broadcast %226 : vector<8x8x1xf32> to vector<8x8x8xf32>
    %228 = arith.mulf %223, %227 : vector<8x8x8xf32>
    "tpu.trace_start"() <{level = 10 : i32, message = "gqk,gkd->gqd"}> : () -> ()
    %cst_91 = arith.constant dense<0.000000e+00> : vector<8x8x32xf32>
    %229 = tpu.matmul %228, %215, %cst_91 {dimension_numbers = #tpu.dot_dimension_numbers<[2], [1], [1], [2], [0, 0, 0, 1, 1, 2], [0], [0]>} : vector<8x8x8xf32>, vector<8x8x32xf32>, vector<8x8x32xf32> -> vector<8x8x32xf32>
    "tpu.trace_stop"() : () -> ()
    %230 = vector.extract_strided_slice %229 {offsets = [0, 0, 0], sizes = [2, 8, 32], strides = [1, 1, 1]} : vector<8x8x32xf32> to vector<2x8x32xf32>
    %231 = vector.extract_strided_slice %229 {offsets = [2, 0, 0], sizes = [2, 8, 32], strides = [1, 1, 1]} : vector<8x8x32xf32> to vector<2x8x32xf32>
    %232 = arith.addf %230, %231 : vector<2x8x32xf32>
    %233 = vector.extract_strided_slice %229 {offsets = [4, 0, 0], sizes = [2, 8, 32], strides = [1, 1, 1]} : vector<8x8x32xf32> to vector<2x8x32xf32>
    %234 = arith.addf %232, %233 : vector<2x8x32xf32>
    %235 = vector.extract_strided_slice %229 {offsets = [6, 0, 0], sizes = [2, 8, 32], strides = [1, 1, 1]} : vector<8x8x32xf32> to vector<2x8x32xf32>
    %236 = arith.addf %234, %235 : vector<2x8x32xf32>
    %237 = vector.shape_cast %236 : vector<2x8x32xf32> to vector<16x32xf32>
    %c10 = arith.constant 10 : index
    %c0_92 = arith.constant 0 : index
    %c0_93 = arith.constant 0 : index
    %238 = vector.load %arg2[%c10, %c0_92, %c0_93] : memref<14x32x32xf32, #tpu.memory_space<vmem>>, vector<1x32x32xf32>
    %239 = vector.shape_cast %238 : vector<1x32x32xf32> to vector<32x32xf32>
    %cst_94 = arith.constant dense<0.000000e+00> : vector<16x32xf32>
    %240 = tpu.matmul %237, %239, %cst_94 {dimension_numbers = #tpu.dot_dimension_numbers<[1], [0], [0], [1], [0, 0, 1, 1], [], []>} : vector<16x32xf32>, vector<32x32xf32>, vector<16x32xf32> -> vector<16x32xf32>
    %c10_95 = arith.constant 10 : index
    %c0_96 = arith.constant 0 : index
    %c0_97 = arith.constant 0 : index
    %241 = vector.load %arg3[%c10_95, %c0_96, %c0_97] : memref<18x16x32xf32, #tpu.memory_space<vmem>>, vector<1x16x32xf32>
    %242 = vector.shape_cast %241 : vector<1x16x32xf32> to vector<16x32xf32>
    %243 = arith.addf %240, %242 : vector<16x32xf32>
    %244 = arith.addf %162, %243 : vector<16x32xf32>
    %c11 = arith.constant 11 : index
    %c0_98 = arith.constant 0 : index
    %c0_99 = arith.constant 0 : index
    %245 = vector.load %arg3[%c11, %c0_98, %c0_99] : memref<18x16x32xf32, #tpu.memory_space<vmem>>, vector<1x16x32xf32>
    %246 = vector.shape_cast %245 : vector<1x16x32xf32> to vector<16x32xf32>
    %c12 = arith.constant 12 : index
    %c0_100 = arith.constant 0 : index
    %c0_101 = arith.constant 0 : index
    %247 = vector.load %arg3[%c12, %c0_100, %c0_101] : memref<18x16x32xf32, #tpu.memory_space<vmem>>, vector<1x16x32xf32>
    %248 = vector.shape_cast %247 : vector<1x16x32xf32> to vector<16x32xf32>
    %cst_102 = arith.constant dense<0.000000e+00> : vector<16xf32>
    %249 = vector.multi_reduction <add>, %244, %cst_102 [1] : vector<16x32xf32> to vector<16xf32>
    %250 = vector.shape_cast %249 : vector<16xf32> to vector<16x1xf32>
    %cst_103 = arith.constant 3.200000e+01 : f32
    %251 = vector.broadcast %cst_103 : f32 to vector<16x1xf32>
    %252 = arith.divf %250, %251 : vector<16x1xf32>
    %253 = arith.mulf %244, %244 : vector<16x32xf32>
    %cst_104 = arith.constant dense<0.000000e+00> : vector<16xf32>
    %254 = vector.multi_reduction <add>, %253, %cst_104 [1] : vector<16x32xf32> to vector<16xf32>
    %255 = vector.shape_cast %254 : vector<16xf32> to vector<16x1xf32>
    %cst_105 = arith.constant 3.200000e+01 : f32
    %256 = vector.broadcast %cst_105 : f32 to vector<16x1xf32>
    %257 = arith.divf %255, %256 : vector<16x1xf32>
    %258 = arith.mulf %252, %252 : vector<16x1xf32>
    %259 = arith.subf %257, %258 : vector<16x1xf32>
    %260 = vector.broadcast %252 : vector<16x1xf32> to vector<16x32xf32>
    %261 = arith.subf %244, %260 : vector<16x32xf32>
    %cst_106 = arith.constant 9.99999974E-6 : f32
    %262 = vector.broadcast %cst_106 : f32 to vector<16x1xf32>
    %263 = arith.addf %259, %262 : vector<16x1xf32>
    %264 = math.rsqrt %263 : vector<16x1xf32>
    %265 = vector.broadcast %264 : vector<16x1xf32> to vector<16x32xf32>
    %266 = arith.mulf %261, %265 : vector<16x32xf32>
    %267 = arith.mulf %266, %246 : vector<16x32xf32>
    %268 = arith.addf %267, %248 : vector<16x32xf32>
    %c11_107 = arith.constant 11 : index
    %c0_108 = arith.constant 0 : index
    %c0_109 = arith.constant 0 : index
    %269 = vector.load %arg2[%c11_107, %c0_108, %c0_109] : memref<14x32x32xf32, #tpu.memory_space<vmem>>, vector<1x32x32xf32>
    %270 = vector.shape_cast %269 : vector<1x32x32xf32> to vector<32x32xf32>
    %cst_110 = arith.constant dense<0.000000e+00> : vector<16x32xf32>
    %271 = tpu.matmul %268, %270, %cst_110 {dimension_numbers = #tpu.dot_dimension_numbers<[1], [0], [0], [1], [0, 0, 1, 1], [], []>} : vector<16x32xf32>, vector<32x32xf32>, vector<16x32xf32> -> vector<16x32xf32>
    %c13 = arith.constant 13 : index
    %c0_111 = arith.constant 0 : index
    %c0_112 = arith.constant 0 : index
    %272 = vector.load %arg3[%c13, %c0_111, %c0_112] : memref<18x16x32xf32, #tpu.memory_space<vmem>>, vector<1x16x32xf32>
    %273 = vector.shape_cast %272 : vector<1x16x32xf32> to vector<16x32xf32>
    %274 = arith.addf %271, %273 : vector<16x32xf32>
    %cst_113 = arith.constant 5.000000e-01 : f32
    %275 = vector.broadcast %cst_113 : f32 to vector<16x32xf32>
    %276 = arith.mulf %275, %274 : vector<16x32xf32>
    %cst_114 = arith.constant 0.707106769 : f32
    %277 = vector.broadcast %cst_114 : f32 to vector<16x32xf32>
    %278 = arith.mulf %274, %277 : vector<16x32xf32>
    %279 = math.erf %278 : vector<16x32xf32>
    %cst_115 = arith.constant 1.000000e+00 : f32
    %280 = vector.broadcast %cst_115 : f32 to vector<16x32xf32>
    %281 = arith.addf %280, %279 : vector<16x32xf32>
    %282 = arith.mulf %276, %281 : vector<16x32xf32>
    %c12_116 = arith.constant 12 : index
    %c0_117 = arith.constant 0 : index
    %c0_118 = arith.constant 0 : index
    %283 = vector.load %arg2[%c12_116, %c0_117, %c0_118] : memref<14x32x32xf32, #tpu.memory_space<vmem>>, vector<1x32x32xf32>
    %284 = vector.shape_cast %283 : vector<1x32x32xf32> to vector<32x32xf32>
    %cst_119 = arith.constant dense<0.000000e+00> : vector<16x32xf32>
    %285 = tpu.matmul %282, %284, %cst_119 {dimension_numbers = #tpu.dot_dimension_numbers<[1], [0], [0], [1], [0, 0, 1, 1], [], []>} : vector<16x32xf32>, vector<32x32xf32>, vector<16x32xf32> -> vector<16x32xf32>
    %c14 = arith.constant 14 : index
    %c0_120 = arith.constant 0 : index
    %c0_121 = arith.constant 0 : index
    %286 = vector.load %arg3[%c14, %c0_120, %c0_121] : memref<18x16x32xf32, #tpu.memory_space<vmem>>, vector<1x16x32xf32>
    %287 = vector.shape_cast %286 : vector<1x16x32xf32> to vector<16x32xf32>
    %288 = arith.addf %285, %287 : vector<16x32xf32>
    %289 = arith.addf %244, %288 : vector<16x32xf32>
    %c15 = arith.constant 15 : index
    %c0_122 = arith.constant 0 : index
    %c0_123 = arith.constant 0 : index
    %290 = vector.load %arg3[%c15, %c0_122, %c0_123] : memref<18x16x32xf32, #tpu.memory_space<vmem>>, vector<1x16x32xf32>
    %291 = vector.shape_cast %290 : vector<1x16x32xf32> to vector<16x32xf32>
    %c16 = arith.constant 16 : index
    %c0_124 = arith.constant 0 : index
    %c0_125 = arith.constant 0 : index
    %292 = vector.load %arg3[%c16, %c0_124, %c0_125] : memref<18x16x32xf32, #tpu.memory_space<vmem>>, vector<1x16x32xf32>
    %293 = vector.shape_cast %292 : vector<1x16x32xf32> to vector<16x32xf32>
    %cst_126 = arith.constant dense<0.000000e+00> : vector<16xf32>
    %294 = vector.multi_reduction <add>, %289, %cst_126 [1] : vector<16x32xf32> to vector<16xf32>
    %295 = vector.shape_cast %294 : vector<16xf32> to vector<16x1xf32>
    %cst_127 = arith.constant 3.200000e+01 : f32
    %296 = vector.broadcast %cst_127 : f32 to vector<16x1xf32>
    %297 = arith.divf %295, %296 : vector<16x1xf32>
    %298 = arith.mulf %289, %289 : vector<16x32xf32>
    %cst_128 = arith.constant dense<0.000000e+00> : vector<16xf32>
    %299 = vector.multi_reduction <add>, %298, %cst_128 [1] : vector<16x32xf32> to vector<16xf32>
    %300 = vector.shape_cast %299 : vector<16xf32> to vector<16x1xf32>
    %cst_129 = arith.constant 3.200000e+01 : f32
    %301 = vector.broadcast %cst_129 : f32 to vector<16x1xf32>
    %302 = arith.divf %300, %301 : vector<16x1xf32>
    %303 = arith.mulf %297, %297 : vector<16x1xf32>
    %304 = arith.subf %302, %303 : vector<16x1xf32>
    %305 = vector.broadcast %297 : vector<16x1xf32> to vector<16x32xf32>
    %306 = arith.subf %289, %305 : vector<16x32xf32>
    %cst_130 = arith.constant 9.99999974E-6 : f32
    %307 = vector.broadcast %cst_130 : f32 to vector<16x1xf32>
    %308 = arith.addf %304, %307 : vector<16x1xf32>
    %309 = math.rsqrt %308 : vector<16x1xf32>
    %310 = vector.broadcast %309 : vector<16x1xf32> to vector<16x32xf32>
    %311 = arith.mulf %306, %310 : vector<16x32xf32>
    %312 = arith.mulf %311, %291 : vector<16x32xf32>
    %313 = arith.addf %312, %293 : vector<16x32xf32>
    %c13_131 = arith.constant 13 : index
    %c0_132 = arith.constant 0 : index
    %c0_133 = arith.constant 0 : index
    %314 = vector.load %arg2[%c13_131, %c0_132, %c0_133] : memref<14x32x32xf32, #tpu.memory_space<vmem>>, vector<1x32x32xf32>
    %315 = vector.shape_cast %314 : vector<1x32x32xf32> to vector<32x32xf32>
    %cst_134 = arith.constant dense<0.000000e+00> : vector<16x32xf32>
    %316 = tpu.matmul %313, %315, %cst_134 {dimension_numbers = #tpu.dot_dimension_numbers<[1], [0], [0], [1], [0, 0, 1, 1], [], []>} : vector<16x32xf32>, vector<32x32xf32>, vector<16x32xf32> -> vector<16x32xf32>
    %c17 = arith.constant 17 : index
    %c0_135 = arith.constant 0 : index
    %c0_136 = arith.constant 0 : index
    %317 = vector.load %arg3[%c17, %c0_135, %c0_136] : memref<18x16x32xf32, #tpu.memory_space<vmem>>, vector<1x16x32xf32>
    %318 = vector.shape_cast %317 : vector<1x16x32xf32> to vector<16x32xf32>
    %319 = arith.addf %316, %318 : vector<16x32xf32>
    %320 = vector.extract_strided_slice %319 {offsets = [0, 0], sizes = [16, 16], strides = [1, 1]} : vector<16x32xf32> to vector<16x16xf32>
    %c0_137 = arith.constant 0 : index
    %c0_138 = arith.constant 0 : index
    %321 = vector.load %arg4[%c0_137, %c0_138] : memref<16x16xf32, #tpu.memory_space<vmem>>, vector<16x16xf32>
    tpu.vector_store %arg4[%c0_137, %c0_138], %320 {strides = array<i32>} : memref<16x16xf32, #tpu.memory_space<vmem>>, vector<16x16xf32>,
    return
  }
  func.func @transform_0(%arg0: i32) -> (i32, i32) {
    %c0_i32 = arith.constant 0 : i32
    %c0_i32_0 = arith.constant 0 : i32
    %c0_i32_1 = arith.constant 0 : i32
    return %c0_i32, %c0_i32_0 : i32, i32
  }
  func.func @transform_1(%arg0: i32) -> (i32, i32, i32) {
    %c0_i32 = arith.constant 0 : i32
    %c0_i32_0 = arith.constant 0 : i32
    %c0_i32_1 = arith.constant 0 : i32
    %c0_i32_2 = arith.constant 0 : i32
    return %c0_i32, %c0_i32_0, %c0_i32_1 : i32, i32, i32
  }
  func.func @transform_2(%arg0: i32) -> (i32, i32, i32) {
    %c0_i32 = arith.constant 0 : i32
    %c0_i32_0 = arith.constant 0 : i32
    %c0_i32_1 = arith.constant 0 : i32
    %c0_i32_2 = arith.constant 0 : i32
    return %c0_i32, %c0_i32_0, %c0_i32_1 : i32, i32, i32
  }
  func.func @transform_3(%arg0: i32) -> (i32, i32) {
    %c0_i32 = arith.constant 0 : i32
    %c0_i32_0 = arith.constant 0 : i32
    %c0_i32_1 = arith.constant 0 : i32
    return %c0_i32, %c0_i32_0 : i32, i32
  }
}

</mosaic_0001>

<bundles_post_ra>
// kernel: spectral_transnet_forward.1
= control target key start
LH: loop header
LB: loop body
LE: loop exit
PB: predicated region body
PF: predicated region fallthrough
CT: control target
= control target key end

     0   :  { %8 = vsyncpa [#allocation3], 0  ;;  %s2582_s0 = inlined_call_operand.vmem [shape: f32[16,32], index: 0, kind: input, shape index: {}]   ;;  %s2583_s1 = inlined_call_operand.hbm [shape: f32[14,32,32], index: 1, kind: input, shape index: {}]   ;;  %s2584_s2 = inlined_call_operand.hbm [shape: f32[18,16,32], index: 2, kind: input, shape index: {}]   ;;  %s2585_s3 = inlined_call_operand.vmem [shape: f32[16,16], index: 3, kind: output, shape index: {}]  }
   0x1   :  { %s16_s14 = sshll.u32 %s2583_s1, 4  ;;  %s17_s14 = int_to_ptr.hbm [resolvable:$true] %s16_s14 }
   0x2   :  { %9 = vsyncpa [#allocation5], 0  ;;  %s2256_s15 = smov [#allocation2]   ;;  %s29_s19 = sshll.u32 %s2584_s2, 4  ;;  %s30_s19 = int_to_ptr.hbm [resolvable:$true] %s29_s19 }
   0x3   :  { %s18_s16 = sshll.u32 %s2256_s15, 4  ;;  %s2257_s20 = smov 128   ;;  %s19_s16 = int_to_ptr.vmem [resolvable:$true] %s18_s16 }
   0x4   :  { %s2258_s21 = smov 8   ;;  %s2259_s22 = smov [#allocation4]  }
   0x5   :  { %24 = dma.hbm_to_vmem [thread:$0]  %s17_s14, 7168, %s19_s16, [#allocation3], %s2257_s20, %s2257_s20, %s2258_s21  }
   0x6   :  { %s31_s23 = sshll.u32 %s2259_s22, 4  ;;  %s32_s23 = int_to_ptr.vmem [resolvable:$true] %s31_s23 }
   0x7   :  { %37 = dma.hbm_to_vmem [thread:$0]  %s30_s19, 4608, %s32_s23, [#allocation5], %s2257_s20, %s2257_s20, %s2258_s21  }
   0x8   :  { %2252 = dma.done.wait [#allocation3], 7168  }
   0x9   :  { %2253 = vsyncadd [#allocation3], 4294960128 }
   0xa   :  { %2254 = dma.done.wait [#allocation5], 4608  }
   0xb   :  { %2255 = vsyncadd [#allocation5], 4294962688  ;;  %v51_v0 = vld [vmem:[#allocation2 + $0x18] sm:$0xff]  ;;  %v50_v1 = vld [vmem:[#allocation2 + $0x10] sm:$0xff]  ;;  %vm54_vm0 = vcmask 261120   ;;  %v2260_v18 = vmov 32.0  }
   0xc   :  { %73 = vmatpush.msra.mxu0 %v51_v0  ;;  %v49_v2 = vld [vmem:[#allocation2 + $0x8] sm:$0xff]  ;;  %v48_v3 = vld [vmem:[#allocation2] sm:$0xff]  ;;  %2110 = vrcp.f32 %v2260_v18  ;;  %v175_v24 = vld [vmem:[#allocation2 + $0x38] sm:$0xff] }
   0xd   :  { %v46_v4 = vld [vmem:[%s2582_s0] sm:$0xff]  ;;  %v47_v5 = vld [vmem:[%s2582_s0 + $0x8] sm:$0xff]  ;;  %v209_v25 = vld [vmem:[#allocation2 + $0x58] sm:$0xff]  ;;  %194 = vmatpush.msra.mxu1 %v175_v24 }
   0xe   :  { %74 = vmatpush.msra.mxu0 %v50_v1  ;;  %v52_v6 = vld [vmem:[#allocation4] sm:$0xff]  ;;  %v53_v10 = vld [vmem:[#allocation4 + $0x8] sm:$0xff]  ;;  %v237_v26 = vld [vmem:[#allocation2 + $0x78] sm:$0xff]  ;;  %222 = vmatpush.msra.mxu2 %v209_v25 }
   0xf   :  { %250 = vmatpush.msra.mxu3 %v237_v26  ;;  %v174_v28 = vld [vmem:[#allocation2 + $0x30] sm:$0xff]  ;;  %v173_v32 = vld [vmem:[#allocation2 + $0x28] sm:$0xff]  ;;  %v172_v36 = vld [vmem:[#allocation2 + $0x20] sm:$0xff] }
  0x10   :  { %75 = vmatpush.msra.mxu0 %v49_v2  ;;  %v208_v29 = vld [vmem:[#allocation2 + $0x50] sm:$0xff]  ;;  %195 = vmatpush.msra.mxu1 %v174_v28  ;;  %v207_v33 = vld [vmem:[#allocation2 + $0x48] sm:$0xff]  ;;  %v206_v37 = vld [vmem:[#allocation2 + $0x40] sm:$0xff] }
  0x11   :  { %v236_v30 = vld [vmem:[#allocation2 + $0x70] sm:$0xff]  ;;  %223 = vmatpush.msra.mxu2 %v208_v29  ;;  %v235_v34 = vld [vmem:[#allocation2 + $0x68] sm:$0xff]  ;;  %v234_v38 = vld [vmem:[#allocation2 + $0x60] sm:$0xff] }
  0x12   :  { %76 = vmatpush.msra.mxu0 %v48_v3  ;;  %v2111_v19 = vpop.eup %2110  ;;  %251 = vmatpush.msra.mxu3 %v236_v30  ;;  %v107_v61 = vld [vmem:[#allocation4 + $0x10] sm:$0xff]  ;;  %v110_v1 = vld [vmem:[#allocation4 + $0x20] sm:$0xff] }
  0x13   :  { %2020 = vmatmul.msk.f32.vlgmr.msra.gmra.mxu0 %vm54_vm0, %v46_v4  ;;  %v119_v20 = vmul.f32 32.0, %v2111_v19  ;;  %vm123_vm1 = vweird.f32 %v2111_v19  ;;  %196 = vmatpush.msra.mxu1 %v173_v32 }
  0x14   :  { %224 = vmatpush.msra.mxu2 %v207_v33  ;;  %252 = vmatpush.msra.mxu3 %v235_v34 }
  0x15   :  { %v120_v21 = vsub.f32 1.0, %v119_v20  ;;  %197 = vmatpush.msra.mxu1 %v172_v36 }
  0x16   :  { %225 = vmatpush.msra.mxu2 %v206_v37  ;;  %253 = vmatpush.msra.mxu3 %v234_v38 }
  0x17   :  { %v121_v22 = vmul.f32 %v2111_v19, %v120_v21 }
  0x19   :  { %v122_v23 = vadd.f32 %v2111_v19, %v121_v22 }
  0x1b   :  { %2021 = vmatmul.msk.f32.gmra.mxu0 %vm54_vm0, %v47_v5  ;;  %v2310_v31 = vsel %vm123_vm1, %v2111_v19, %v122_v23 }
  0x90   :  { %v78_v7 = vpop.f32.mrf.mxu0 }
  0x91   :  { %v2296_v8 = vadd.f32 %v78_v7, %v52_v6  ;;  %v108_v7 = vld [vmem:[#allocation4 + $0x18] sm:$0xff] }
  0x93   :  { %v112_v9 = vsel %vm54_vm0, %v2296_v8, 0.0  ;;  %v127_v11 = vmul.f32 %v2296_v8, %v2296_v8 }
  0x94   :  { %113 = vadd.xlane.f32.xlu0 %v112_v9 }
  0x95   :  { %v129_v15 = vsel %vm54_vm0, %v127_v11, 0.0  ;;  %v111_v11 = vld [vmem:[#allocation4 + $0x28] sm:$0xff] }
  0x98   :  { %v81_v12 = vpop.f32.mrf.mxu0 }
  0x99   :  { %v2302_v13 = vadd.f32 %v81_v12, %v53_v10 }
  0x9b   :  { %v115_v14 = vsel %vm54_vm0, %v2302_v13, 0.0  ;;  %v128_v16 = vmul.f32 %v2302_v13, %v2302_v13 }
  0x9c   :  { %116 = vadd.xlane.f32.xlu1 %v115_v14  ;;  %130 = vadd.xlane.f32.xlu0 %v129_v15  ;;  %v84_v15 = vlaneseq }
  0x9d   :  { %v132_v17 = vsel %vm54_vm0, %v128_v16, 0.0 }
  0x9e   :  { %v85_v16 = vand.u32 127, %v84_v15 }
  0xa0   :  { %vm96_vm8 = vcmp.ge.s32.totalorder %v85_v16, 16  ;;  %vm97_vm9 = vcmp.lt.s32.totalorder %v85_v16, 24  ;;  %vm101_vm10 = vcmp.ge.s32.totalorder %v85_v16, 24  ;;  %vm102_vm11 = vcmp.lt.s32.totalorder %v85_v16, 32 }
  0xa1   :  { %vm91_vm12 = vcmp.ge.s32.totalorder %v85_v16, 8  ;;  %vm92_vm13 = vcmp.lt.s32.totalorder %v85_v16, 16  ;;  %vm98_vm14 = vmand %vm96_vm8, %vm97_vm9  ;;  %vm87_vm1 = vcmp.lt.s32.totalorder %v85_v16, 8 }
  0xa2   :  { %vm103_vm15 = vmand %vm101_vm10, %vm102_vm11 }
  0xa4   :  { %133 = vadd.xlane.f32.xlu1 %v132_v17  ;;  %v2261_v17 = vmov 0.0  }
  0xa5   :  { %v2324_v18 = vsel %vm98_vm14, 1.0, %v2261_v17  ;;  %v2326_v19 = vsel %vm103_vm15, 1.0, %v2261_v17  ;;  %v2328_v20 = vsel %vm87_vm1, 1.0, %v2261_v17 }
 0x107   :  { %v114_v27 = vpop.xlane.xlu0 %113 }
 0x108   :  { %v125_v35 = vmul.f32 %v2310_v31, %v114_v27 }
 0x10a   :  { %v137_v41 = vmul.f32 %v125_v35, %v125_v35  ;;  %v141_v59 = vsub.f32 %v2296_v8, %v125_v35 }
 0x10f   :  { %v117_v39 = vpop.xlane.xlu1 %116  ;;  %v131_v40 = vpop.xlane.xlu0 %130 }
 0x110   :  { %v135_v42 = vmul.f32 %v131_v40, %v2310_v31  ;;  %v126_v44 = vmul.f32 %v2310_v31, %v117_v39 }
 0x112   :  { %v139_v43 = vsub.f32 %v135_v42, %v137_v41  ;;  %v138_v47 = vmul.f32 %v126_v44, %v126_v44  ;;  %v142_v6 = vsub.f32 %v2302_v13, %v126_v44 }
 0x114   :  { %v143_v45 = vadd.f32 1e-05, %v139_v43 }
 0x116   :  { %2112 = vrsqrt.f32 %v143_v45  ;;  %vm151_vm3 = vweird.f32 %v143_v45 }
 0x117   :  { %v134_v46 = vpop.xlane.xlu1 %133 }
 0x118   :  { %v136_v48 = vmul.f32 %v134_v46, %v2310_v31 }
 0x11a   :  { %v140_v49 = vsub.f32 %v136_v48, %v138_v47 }
 0x11c   :  { %v2113_v50 = vpop.eup %2112  ;;  %v144_v51 = vadd.f32 1e-05, %v140_v49 }
 0x11d   :  { %v146_v52 = vmul.f32 %v2113_v50, %v143_v45  ;;  %vm152_vm2 = vweird.f32 %v2113_v50 }
 0x11e   :  { %2114 = vrsqrt.f32 %v144_v51  ;;  %vm153_vm4 = vmor %vm151_vm3, %vm152_vm2  ;;  %vm161_vm6 = vweird.f32 %v144_v51  ;;  %vm475_vm3 = vcmask 64512  }
 0x11f   :  { %v147_v53 = vmul.f32 %v2113_v50, %v146_v52  ;;  %vm93_vm2 = vmand %vm91_vm12, %vm92_vm13 }
 0x120   :  { %v2330_v21 = vsel %vm93_vm2, 1.0, %v2261_v17 }
 0x121   :  { %v148_v54 = vmul.f32 0.5, %v147_v53 }
 0x123   :  { %v149_v55 = vsub.f32 1.5, %v148_v54 }
 0x124   :  { %v2115_v56 = vpop.eup %2114 }
 0x125   :  { %v150_v57 = vmul.f32 %v2113_v50, %v149_v55  ;;  %v156_v58 = vmul.f32 %v2115_v56, %v144_v51  ;;  %vm162_vm5 = vweird.f32 %v2115_v56 }
 0x126   :  { %vm163_vm7 = vmor %vm161_vm6, %vm162_vm5 }
 0x127   :  { %v157_v60 = vmul.f32 %v2115_v56, %v156_v58  ;;  %v154_v62 = vsel %vm153_vm4, %v2113_v50, %v150_v57 }
 0x128   :  { %v165_v63 = vmul.f32 %v154_v62, %v141_v59 }
 0x129   :  { %v158_v0 = vmul.f32 0.5, %v157_v60 }
 0x12a   :  { %v167_v2 = vmul.f32 %v165_v63, %v107_v61 }
 0x12b   :  { %v159_v3 = vsub.f32 1.5, %v158_v0 }
 0x12c   :  { %v169_v4 = vadd.f32 %v167_v2, %v110_v1 }
 0x12d   :  { %v160_v5 = vmul.f32 %v2115_v56, %v159_v3 }
 0x12e   :  { %2026 = vmatmul.msk.f32.vlgmr.msra.gmra.mxu1 %vm54_vm0, %v169_v4  ;;  %2028 = vmatmul.msk.f32.vlgmr.msra.gmra.mxu2 %vm54_vm0, %v169_v4 }
 0x12f   :  { %2030 = vmatmul.msk.f32.vlgmr.msra.gmra.mxu3 %vm54_vm0, %v169_v4  ;;  %v164_v9 = vsel %vm163_vm7, %v2115_v56, %v160_v5 }
 0x130   :  { %v166_v10 = vmul.f32 %v164_v9, %v142_v6 }
 0x132   :  { %v168_v12 = vmul.f32 %v166_v10, %v108_v7 }
 0x134   :  { %v170_v14 = vadd.f32 %v168_v12, %v111_v11 }
 0x136   :  { %2027 = vmatmul.msk.f32.gmra.mxu1 %vm54_vm0, %v170_v14  ;;  %2029 = vmatmul.msk.f32.gmra.mxu2 %vm54_vm0, %v170_v14 }
 0x137   :  { %2031 = vmatmul.msk.f32.gmra.mxu3 %vm54_vm0, %v170_v14 }
 0x1ab   :  { %v199_v28 = vpop.f32.mrf.mxu1 }
 0x1b1   :  { %v227_v22 = vpop.f32.mrf.mxu2 }
 0x1b2   :  { %v265_v23 = vmul.f32 %v2324_v18, %v227_v22  ;;  %v267_v24 = vmul.f32 %v2326_v19, %v227_v22  ;;  %v261_v25 = vmul.f32 %v2328_v20, %v227_v22  ;;  %v263_v26 = vmul.f32 %v2330_v21, %v227_v22  ;;  %v255_v27 = vpop.f32.mrf.mxu3 }
 0x1b3   :  { %v269_v29 = vmul.f32 %v2328_v20, %v255_v27  ;;  %v271_v30 = vmul.f32 %v2330_v21, %v255_v27  ;;  %v202_v38 = vpop.f32.mrf.mxu1  ;;  %v273_v39 = vmul.f32 %v2324_v18, %v255_v27  ;;  %v275_v40 = vmul.f32 %v2326_v19, %v255_v27 }
 0x1b4   :  { %2032 = vmatpush.xpose.msk.msrb.mxu0 %vm54_vm0, %v261_v25  ;;  %2036 = vmatpush.xpose.msk.msrb.mxu2 %vm54_vm0, %v263_v26 }
 0x1b7   :  { %2033 = vmatmul.msk.f32.vlgmr.msrb.gmra.mxu0 %vm54_vm0, %v199_v28  ;;  %2037 = vmatmul.msk.f32.vlgmr.msrb.gmra.mxu2 %vm54_vm0, %v199_v28 }
 0x1b8   :  { %2040 = vmatpush.xpose.msk.msra.mxu0 %vm54_vm0, %v265_v23  ;;  %2044 = vmatpush.xpose.msk.msra.mxu2 %vm54_vm0, %v267_v24 }
 0x1b9   :  { %v230_v32 = vpop.f32.mrf.mxu2 }
 0x1ba   :  { %v266_v33 = vmul.f32 %v2324_v18, %v230_v32  ;;  %v268_v34 = vmul.f32 %v2326_v19, %v230_v32  ;;  %v262_v35 = vmul.f32 %v2328_v20, %v230_v32  ;;  %v264_v36 = vmul.f32 %v2330_v21, %v230_v32  ;;  %v258_v37 = vpop.f32.mrf.mxu3 }
 0x1bb   :  { %v270_v41 = vmul.f32 %v2328_v20, %v258_v37  ;;  %v272_v42 = vmul.f32 %v2330_v21, %v258_v37  ;;  %v274_v43 = vmul.f32 %v2324_v18, %v258_v37  ;;  %v276_v44 = vmul.f32 %v2326_v19, %v258_v37 }
 0x1bc   :  { %582 = vmatpush.msrb.mxu0 %v269_v29  ;;  %628 = vmatpush.msrb.mxu2 %v271_v30 }
 0x1bd   :  { %2034 = vmatpush.xpose.msk.msrb.mxu1 %vm54_vm0, %v262_v35  ;;  %2038 = vmatpush.xpose.msk.msrb.mxu3 %vm54_vm0, %v264_v36 }
 0x1bf   :  { %2041 = vmatmul.msk.f32.vlgmr.msra.gmra.mxu0 %vm54_vm0, %v199_v28  ;;  %2045 = vmatmul.msk.f32.vlgmr.msra.gmra.mxu2 %vm54_vm0, %v199_v28 }
 0x1c0   :  { %2035 = vmatmul.msk.f32.vlgmr.msrb.gmra.mxu1 %vm54_vm0, %v202_v38  ;;  %2039 = vmatmul.msk.f32.vlgmr.msrb.gmra.mxu3 %vm54_vm0, %v202_v38 }
 0x1c1   :  { %2042 = vmatpush.xpose.msk.msra.mxu1 %vm54_vm0, %v266_v33  ;;  %2046 = vmatpush.xpose.msk.msra.mxu3 %vm54_vm0, %v268_v34 }
 0x1c2   :  { %674 = vmatpush.msra.mxu0 %v273_v39  ;;  %720 = vmatpush.msra.mxu2 %v275_v40 }
 0x1c5   :  { %605 = vmatpush.msrb.mxu1 %v270_v41  ;;  %651 = vmatpush.msrb.mxu3 %v272_v42 }
 0x1c8   :  { %2043 = vmatmul.msk.f32.vlgmr.msra.gmra.mxu1 %vm54_vm0, %v202_v38  ;;  %2047 = vmatmul.msk.f32.vlgmr.msra.gmra.mxu3 %vm54_vm0, %v202_v38 }
 0x1c9   :  { %697 = vmatpush.msra.mxu1 %v274_v43  ;;  %743 = vmatpush.msra.mxu3 %v276_v44 }
 0x234   :  { %v300_v47 = vpop.f32.mrf.mxu0 }
 0x235   :  { %v467_v49 = vmul.f32 0.35355338, %v300_v47 }
 0x237   :  { %v476_v55 = vsel %vm475_vm3, %v467_v49, -inf }
 0x23a   :  { %v349_v45 = vpop.f32.mrf.mxu2 }
 0x23b   :  { %v469_v46 = vmul.f32 0.35355338, %v349_v45 }
 0x23c   :  { %v395_v57 = vpop.f32.mrf.mxu0 }
 0x23d   :  { %v482_v48 = vsel %vm475_vm3, %v469_v46, -inf  ;;  %v326_v53 = vpop.f32.mrf.mxu1  ;;  %v471_v60 = vmul.f32 0.35355338, %v395_v57 }
 0x23e   :  { %483 = vmax.xlane.f32.xlu2 %v482_v48  ;;  %v468_v59 = vmul.f32 0.35355338, %v326_v53 }
 0x23f   :  { %v488_v63 = vsel %vm475_vm3, %v471_v60, -inf }
 0x240   :  { %v479_v1 = vsel %vm475_vm3, %v468_v59, -inf }
 0x242   :  { %v441_v52 = vpop.f32.mrf.mxu2 }
 0x243   :  { %v372_v50 = vpop.f32.mrf.mxu3  ;;  %v473_v54 = vmul.f32 0.35355338, %v441_v52 }
 0x244   :  { %v470_v51 = vmul.f32 0.35355338, %v372_v50 }
 0x245   :  { %v494_v58 = vsel %vm475_vm3, %v473_v54, -inf  ;;  %v418_v2 = vpop.f32.mrf.mxu1 }
 0x246   :  { %v485_v56 = vsel %vm475_vm3, %v470_v51, -inf  ;;  %477 = vmax.xlane.f32.xlu2 %v476_v55  ;;  %495 = vmax.xlane.f32.xlu1 %v494_v58  ;;  %v472_v3 = vmul.f32 0.35355338, %v418_v2 }
 0x247   :  { %486 = vmax.xlane.f32.xlu0 %v485_v56 }
 0x248   :  { %v491_v4 = vsel %vm475_vm3, %v472_v3, -inf }
 0x24b   :  { %v464_v61 = vpop.f32.mrf.mxu3 }
 0x24c   :  { %v474_v62 = vmul.f32 0.35355338, %v464_v61 }
 0x24e   :  { %v497_v0 = vsel %vm475_vm3, %v474_v62, -inf  ;;  %480 = vmax.xlane.f32.xlu2 %v479_v1 }
 0x24f   :  { %489 = vmax.xlane.f32.xlu0 %v488_v63  ;;  %498 = vmax.xlane.f32.xlu1 %v497_v0 }
 0x256   :  { %492 = vmax.xlane.f32.xlu2 %v491_v4 }
 0x2b1   :  { %v484_v5 = vpop.xlane.xlu2 %483 }
 0x2b2   :  { %v502_v6 = vsub.f32 %v469_v46, %v484_v5 }
 0x2b4   :  { %v512_v7 = vmul.f32 1.442695, %v502_v6 }
 0x2b6   :  { %2116 = vpow2.f32 %v512_v7 }
 0x2b9   :  { %v478_v9 = vpop.xlane.xlu2 %477  ;;  %v496_v11 = vpop.xlane.xlu1 %495 }
 0x2ba   :  { %v487_v10 = vpop.xlane.xlu0 %486  ;;  %v500_v12 = vsub.f32 %v467_v49, %v478_v9  ;;  %v506_v15 = vsub.f32 %v473_v54, %v496_v11 }
 0x2bb   :  { %v503_v14 = vsub.f32 %v470_v51, %v487_v10 }
 0x2bc   :  { %v2117_v16 = vpop.eup %2116  ;;  %v508_v17 = vmul.f32 1.442695, %v500_v12  ;;  %v520_v23 = vmul.f32 1.442695, %v506_v15  ;;  %v757_v15 = vld [vmem:[#allocation2 + $0x90] sm:$0xff] }
 0x2bd   :  { %v514_v22 = vmul.f32 1.442695, %v503_v14  ;;  %v530_v24 = vsel %vm475_vm3, %v2117_v16, 0.0  ;;  %v758_v14 = vld [vmem:[#allocation2 + $0x98] sm:$0xff] }
 0x2be   :  { %2118 = vpow2.f32 %v508_v17  ;;  %531 = vadd.xlane.f32.xlu0 %v530_v24  ;;  %v755_v17 = vld [vmem:[#allocation2 + $0x80] sm:$0xff] }
 0x2bf   :  { %2120 = vpow2.f32 %v520_v23 }
 0x2c0   :  { %2122 = vpow2.f32 %v514_v22 }
 0x2c1   :  { %v481_v26 = vpop.xlane.xlu2 %480 }
 0x2c2   :  { %v490_v25 = vpop.xlane.xlu0 %489  ;;  %v499_v28 = vpop.xlane.xlu1 %498  ;;  %v501_v29 = vsub.f32 %v468_v59, %v481_v26 }
 0x2c3   :  { %v504_v27 = vsub.f32 %v471_v60, %v490_v25  ;;  %v507_v30 = vsub.f32 %v474_v62, %v499_v28 }
 0x2c4   :  { %v2119_v32 = vpop.eup %2118  ;;  %v510_v34 = vmul.f32 1.442695, %v501_v29 }
 0x2c5   :  { %v516_v33 = vmul.f32 1.442695, %v504_v27  ;;  %v2121_v35 = vpop.eup %2120  ;;  %v522_v36 = vmul.f32 1.442695, %v507_v30  ;;  %v524_v37 = vsel %vm475_vm3, %v2119_v32, 0.0 }
 0x2c6   :  { %v2123_v38 = vpop.eup %2122  ;;  %v542_v39 = vsel %vm475_vm3, %v2121_v35, 0.0  ;;  %525 = vadd.xlane.f32.xlu1 %v524_v37  ;;  %v760_v37 = vld [vmem:[#allocation4 + $0x30] sm:$0xff] }
 0x2c7   :  { %2124 = vpow2.f32 %v516_v33  ;;  %543 = vadd.xlane.f32.xlu0 %v542_v39  ;;  %v533_v40 = vsel %vm475_vm3, %v2123_v38, 0.0 }
 0x2c8   :  { %2126 = vpow2.f32 %v522_v36  ;;  %534 = vadd.xlane.f32.xlu2 %v533_v40 }
 0x2c9   :  { %2128 = vpow2.f32 %v510_v34  ;;  %v493_v41 = vpop.xlane.xlu2 %492 }
 0x2ca   :  { %v505_v42 = vsub.f32 %v472_v3, %v493_v41 }
 0x2cc   :  { %v518_v44 = vmul.f32 1.442695, %v505_v42 }
 0x2cd   :  { %v2125_v43 = vpop.eup %2124 }
 0x2ce   :  { %v2127_v45 = vpop.eup %2126  ;;  %v536_v46 = vsel %vm475_vm3, %v2125_v43, 0.0  ;;  %2130 = vpow2.f32 %v518_v44 }
 0x2cf   :  { %v2129_v47 = vpop.eup %2128  ;;  %v545_v48 = vsel %vm475_vm3, %v2127_v45, 0.0 }
 0x2d0   :  { %546 = vadd.xlane.f32.xlu0 %v545_v48  ;;  %v527_v49 = vsel %vm475_vm3, %v2129_v47, 0.0  ;;  %537 = vadd.xlane.f32.xlu2 %v536_v46 }
 0x2d1   :  { %528 = vadd.xlane.f32.xlu1 %v527_v49 }
 0x2d4   :  { %v2131_v50 = vpop.eup %2130 }
 0x2d5   :  { %v539_v51 = vsel %vm475_vm3, %v2131_v50, 0.0 }
 0x2d9   :  { %540 = vadd.xlane.f32.xlu1 %v539_v51  ;;  %v854_v51 = vld [vmem:[#allocation2 + $0xb0] sm:$0xff] }
 0x331   :  { %v532_v52 = vpop.xlane.xlu0 %531 }
 0x332   :  { %2132 = vrcp.f32 %v532_v52  ;;  %v853_v52 = vld [vmem:[#allocation2 + $0xa8] sm:$0xff] }
 0x338   :  { %v2133_v53 = vpop.eup %2132 }
 0x339   :  { %v558_v54 = vmul.f32 %v2133_v53, %v2117_v16  ;;  %v526_v55 = vpop.xlane.xlu1 %525  ;;  %v756_v16 = vld [vmem:[#allocation2 + $0x88] sm:$0xff]  ;;  %v852_v53 = vld [vmem:[#allocation2 + $0xa0] sm:$0xff] }
 0x33a   :  { %v544_v56 = vpop.xlane.xlu0 %543  ;;  %2134 = vrcp.f32 %v526_v55 }
 0x33b   :  { %2136 = vrcp.f32 %v544_v56  ;;  %v535_v57 = vpop.xlane.xlu2 %534  ;;  %2050 = vmatmul.msk.f32.vlgmr.msrb.gmra.mxu2 %vm475_vm3, %v558_v54 }
 0x33c   :  { %2138 = vrcp.f32 %v535_v57 }
 0x340   :  { %v2135_v58 = vpop.eup %2134 }
 0x341   :  { %v2137_v59 = vpop.eup %2136  ;;  %v556_v60 = vmul.f32 %v2135_v58, %v2119_v32 }
 0x342   :  { %v2139_v61 = vpop.eup %2138  ;;  %v562_v62 = vmul.f32 %v2137_v59, %v2121_v35 }
 0x343   :  { %v547_v63 = vpop.xlane.xlu0 %546  ;;  %v559_v0 = vmul.f32 %v2139_v61, %v2123_v38  ;;  %v538_v2 = vpop.xlane.xlu2 %537  ;;  %2048 = vmatmul.msk.f32.vlgmr.msrb.gmra.mxu0 %vm475_vm3, %v556_v60 }
 0x344   :  { %2140 = vrcp.f32 %v547_v63  ;;  %v529_v1 = vpop.xlane.xlu1 %528  ;;  %2054 = vmatmul.msk.f32.vlgmr.msra.gmra.mxu2 %vm475_vm3, %v562_v62  ;;  %780 = vmatpush.msrb.mxu0 %v758_v14  ;;  %v794_v14 = vld [vmem:[#allocation4 + $0x40] sm:$0xff] }
 0x345   :  { %2142 = vrcp.f32 %v529_v1  ;;  %2051 = vmatmul.msk.f32.vlgmr.msrb.gmra.mxu3 %vm475_vm3, %v559_v0 }
 0x346   :  { %2144 = vrcp.f32 %v538_v2  ;;  %781 = vmatpush.msrb.mxu0 %v757_v15 }
 0x348   :  { %782 = vmatpush.msrb.mxu0 %v756_v16 }
 0x34a   :  { %v2141_v3 = vpop.eup %2140  ;;  %783 = vmatpush.msrb.mxu0 %v755_v17 }
 0x34b   :  { %v2143_v4 = vpop.eup %2142  ;;  %v563_v5 = vmul.f32 %v2141_v3, %v2127_v45 }
 0x34c   :  { %v2145_v6 = vpop.eup %2144  ;;  %v557_v7 = vmul.f32 %v2143_v4, %v2129_v47  ;;  %v541_v9 = vpop.xlane.xlu1 %540 }
 0x34d   :  { %v560_v10 = vmul.f32 %v2145_v6, %v2125_v43  ;;  %2146 = vrcp.f32 %v541_v9  ;;  %2055 = vmatmul.msk.f32.vlgmr.msra.gmra.mxu3 %vm475_vm3, %v563_v5  ;;  %v761_v43 = vld [vmem:[#allocation4 + $0x38] sm:$0xff] }
 0x34e   :  { %2049 = vmatmul.msk.f32.vlgmr.msrb.gmra.mxu1 %vm475_vm3, %v557_v7 }
 0x34f   :  { %2052 = vmatmul.msk.f32.vlgmr.msra.gmra.mxu0 %vm475_vm3, %v560_v10 }
 0x353   :  { %v2147_v11 = vpop.eup %2146 }
 0x354   :  { %v561_v12 = vmul.f32 %v2147_v11, %v2131_v50  ;;  %v855_v50 = vld [vmem:[#allocation2 + $0xb8] sm:$0xff] }
 0x355   :  { %877 = vmatpush.msrb.mxu1 %v855_v50 }
 0x356   :  { %2053 = vmatmul.msk.f32.vlgmr.msra.gmra.mxu1 %vm475_vm3, %v561_v12 }
 0x357   :  { %878 = vmatpush.msrb.mxu1 %v854_v51 }
 0x359   :  { %879 = vmatpush.msrb.mxu1 %v853_v52 }
 0x35b   :  { %880 = vmatpush.msrb.mxu1 %v852_v53 }
 0x3be   :  { %v630_v23 = vpop.f32.mrf.mxu2 }
 0x3c0   :  { %v584_v22 = vpop.f32.mrf.mxu0 }
 0x3c1   :  { %v748_v24 = vadd.f32 %v630_v23, %v584_v22  ;;  %v797_v23 = vld [vmem:[#allocation4 + $0x50] sm:$0xff] }
 0x3c7   :  { %v722_v29 = vpop.f32.mrf.mxu2 }
 0x3c8   :  { %v653_v25 = vpop.f32.mrf.mxu3 }
 0x3cb   :  { %v607_v26 = vpop.f32.mrf.mxu1 }
 0x3cc   :  { %v676_v27 = vpop.f32.mrf.mxu0  ;;  %v749_v32 = vadd.f32 %v653_v25, %v607_v26 }
 0x3cd   :  { %v750_v28 = vadd.f32 %v748_v24, %v676_v27 }
 0x3cf   :  { %v752_v30 = vadd.f32 %v750_v28, %v722_v29  ;;  %v795_v29 = vld [vmem:[#allocation4 + $0x48] sm:$0xff] }
 0x3d0   :  { %v745_v35 = vpop.f32.mrf.mxu3 }
 0x3d1   :  { %2056 = vmatmul.msk.f32.vlgmr.msrb.gmra.mxu0 %vm54_vm0, %v752_v30 }
 0x3d3   :  { %v699_v33 = vpop.f32.mrf.mxu1 }
 0x3d4   :  { %v751_v34 = vadd.f32 %v749_v32, %v699_v33  ;;  %v798_v33 = vld [vmem:[#allocation4 + $0x58] sm:$0xff] }
 0x3d6   :  { %v753_v36 = vadd.f32 %v751_v34, %v745_v35 }
 0x3d9   :  { %2057 = vmatmul.msk.f32.gmra.mxu0 %vm54_vm0, %v753_v36  ;;  %v857_v36 = vld [vmem:[#allocation4 + $0x60] sm:$0xff] }
 0x44e   :  { %v785_v38 = vpop.f32.mrf.mxu0 }
 0x44f   :  { %v786_v39 = vadd.f32 %v785_v38, %v760_v37 }
 0x451   :  { %v2391_v40 = vadd.f32 %v786_v39, %v2296_v8 }
 0x453   :  { %v799_v41 = vsel %vm54_vm0, %v2391_v40, 0.0  ;;  %v807_v42 = vmul.f32 %v2391_v40, %v2391_v40 }
 0x454   :  { %800 = vadd.xlane.f32.xlu2 %v799_v41 }
 0x455   :  { %v809_v44 = vsel %vm54_vm0, %v807_v42, 0.0  ;;  %v858_v42 = vld [vmem:[#allocation4 + $0x68] sm:$0xff] }
 0x456   :  { %v788_v45 = vpop.f32.mrf.mxu0  ;;  %810 = vadd.xlane.f32.xlu0 %v809_v44 }
 0x457   :  { %v789_v46 = vadd.f32 %v788_v45, %v761_v43 }
 0x459   :  { %v2399_v47 = vadd.f32 %v789_v46, %v2302_v13 }
 0x45b   :  { %v802_v8 = vsel %vm54_vm0, %v2399_v47, 0.0  ;;  %v808_v48 = vmul.f32 %v2399_v47, %v2399_v47 }
 0x45c   :  { %803 = vadd.xlane.f32.xlu1 %v802_v8 }
 0x45d   :  { %v812_v49 = vsel %vm54_vm0, %v808_v48, 0.0 }
 0x45e   :  { %813 = vadd.xlane.f32.xlu2 %v812_v49 }
 0x4c7   :  { %v801_v54 = vpop.xlane.xlu2 %800 }
 0x4c8   :  { %v805_v13 = vmul.f32 %v801_v54, %v2310_v31 }
 0x4c9   :  { %v811_v55 = vpop.xlane.xlu0 %810 }
 0x4ca   :  { %v817_v56 = vmul.f32 %v805_v13, %v805_v13  ;;  %v815_v57 = vmul.f32 %v811_v55, %v2310_v31  ;;  %v821_v12 = vsub.f32 %v2391_v40, %v805_v13 }
 0x4cc   :  { %v819_v58 = vsub.f32 %v815_v57, %v817_v56  ;;  %v980_v56 = vld [vmem:[#allocation2 + $0xd8] sm:$0xff] }
 0x4cd   :  { %1002 = vmatpush.msrb.mxu2 %v980_v56 }
 0x4ce   :  { %v823_v59 = vadd.f32 1e-05, %v819_v58 }
 0x4cf   :  { %v804_v60 = vpop.xlane.xlu1 %803 }
 0x4d0   :  { %2148 = vrsqrt.f32 %v823_v59  ;;  %v806_v61 = vmul.f32 %v804_v60, %v2310_v31  ;;  %vm831_vm5 = vweird.f32 %v823_v59  ;;  %v979_v60 = vld [vmem:[#allocation2 + $0xd0] sm:$0xff] }
 0x4d1   :  { %v814_v62 = vpop.xlane.xlu2 %813  ;;  %1003 = vmatpush.msrb.mxu2 %v979_v60 }
 0x4d2   :  { %v818_v63 = vmul.f32 %v806_v61, %v806_v61  ;;  %v816_v0 = vmul.f32 %v814_v62, %v2310_v31  ;;  %v822_v28 = vsub.f32 %v2399_v47, %v806_v61 }
 0x4d4   :  { %v820_v1 = vsub.f32 %v816_v0, %v818_v63 }
 0x4d6   :  { %v2149_v2 = vpop.eup %2148  ;;  %v824_v3 = vadd.f32 1e-05, %v820_v1  ;;  %v978_v1 = vld [vmem:[#allocation2 + $0xc8] sm:$0xff] }
 0x4d7   :  { %v826_v4 = vmul.f32 %v2149_v2, %v823_v59  ;;  %vm832_vm4 = vweird.f32 %v2149_v2  ;;  %1004 = vmatpush.msrb.mxu2 %v978_v1 }
 0x4d8   :  { %2150 = vrsqrt.f32 %v824_v3  ;;  %vm833_vm6 = vmor %vm831_vm5, %vm832_vm4  ;;  %vm841_vm8 = vweird.f32 %v824_v3 }
 0x4d9   :  { %v827_v5 = vmul.f32 %v2149_v2, %v826_v4 }
 0x4db   :  { %v828_v6 = vmul.f32 0.5, %v827_v5  ;;  %v977_v5 = vld [vmem:[#allocation2 + $0xc0] sm:$0xff] }
 0x4dc   :  { %1005 = vmatpush.msrb.mxu2 %v977_v5 }
 0x4dd   :  { %v829_v7 = vsub.f32 1.5, %v828_v6 }
 0x4de   :  { %v2151_v9 = vpop.eup %2150 }
 0x4df   :  { %v830_v10 = vmul.f32 %v2149_v2, %v829_v7  ;;  %v836_v11 = vmul.f32 %v2151_v9, %v824_v3  ;;  %vm842_vm7 = vweird.f32 %v2151_v9 }
 0x4e0   :  { %vm843_vm9 = vmor %vm841_vm8, %vm842_vm7 }
 0x4e1   :  { %v834_v15 = vsel %vm833_vm6, %v2149_v2, %v830_v10  ;;  %v837_v16 = vmul.f32 %v2151_v9, %v836_v11 }
 0x4e2   :  { %v845_v17 = vmul.f32 %v834_v15, %v821_v12 }
 0x4e3   :  { %v838_v22 = vmul.f32 0.5, %v837_v16 }
 0x4e4   :  { %v847_v24 = vmul.f32 %v845_v17, %v794_v14 }
 0x4e5   :  { %v839_v25 = vsub.f32 1.5, %v838_v22 }
 0x4e6   :  { %v849_v26 = vadd.f32 %v847_v24, %v797_v23 }
 0x4e7   :  { %v840_v27 = vmul.f32 %v2151_v9, %v839_v25 }
 0x4e8   :  { %2058 = vmatmul.msk.f32.vlgmr.msrb.gmra.mxu1 %vm54_vm0, %v849_v26 }
 0x4e9   :  { %v844_v30 = vsel %vm843_vm9, %v2151_v9, %v840_v27 }
 0x4ea   :  { %v846_v32 = vmul.f32 %v844_v30, %v822_v28 }
 0x4ec   :  { %v848_v34 = vmul.f32 %v846_v32, %v795_v29 }
 0x4ee   :  { %v850_v35 = vadd.f32 %v848_v34, %v798_v33 }
 0x4f0   :  { %2059 = vmatmul.msk.f32.gmra.mxu1 %vm54_vm0, %v850_v35 }
 0x565   :  { %v882_v37 = vpop.f32.mrf.mxu1 }
 0x566   :  { %v2414_v38 = vadd.f32 %v882_v37, %v857_v36 }
 0x568   :  { %v2417_v39 = vmul.f32 0.70710677, %v2414_v38 }
 0x56a   :  { %v892_v41 = vmul.f32 %v2417_v39, %v2417_v39 }
 0x56c   :  { %v893_v43 = vmin.f32 %v892_v41, 16.0 }
 0x56d   :  { %v885_v44 = vpop.f32.mrf.mxu1 }
 0x56e   :  { %v894_v45 = vmul.f32 2.1237322e-06, %v893_v43  ;;  %v905_v46 = vmul.f32 3.8918573e-05, %v893_v43  ;;  %v2421_v8 = vadd.f32 %v885_v44, %v858_v42 }
 0x570   :  { %v895_v48 = vadd.f32 0.00028619796, %v894_v45  ;;  %v906_v49 = vadd.f32 0.001143296, %v905_v46  ;;  %v2424_v50 = vmul.f32 0.70710677, %v2421_v8 }
 0x572   :  { %v896_v51 = vmul.f32 %v895_v48, %v893_v43  ;;  %v907_v52 = vmul.f32 %v906_v49, %v893_v43  ;;  %v932_v53 = vmul.f32 %v2424_v50, %v2424_v50 }
 0x574   :  { %v908_v54 = vadd.f32 0.014752088, %v907_v52  ;;  %v897_v13 = vadd.f32 0.0036580483, %v896_v51  ;;  %v933_v55 = vmin.f32 %v932_v53, 16.0 }
 0x576   :  { %v909_v57 = vmul.f32 %v908_v54, %v893_v43  ;;  %v934_v58 = vmul.f32 2.1237322e-06, %v933_v55  ;;  %v945_v59 = vmul.f32 3.8918573e-05, %v933_v55  ;;  %v898_v62 = vmul.f32 %v897_v13, %v893_v43 }
 0x578   :  { %v910_v61 = vadd.f32 0.112945676, %v909_v57  ;;  %v935_v63 = vadd.f32 0.00028619796, %v934_v58  ;;  %v946_v0 = vadd.f32 0.001143296, %v945_v59 }
 0x579   :  { %v899_v7 = vadd.f32 0.05243302, %v898_v62  ;;  %v888_v59 = vmul.f32 0.5, %v2414_v38  ;;  %v982_v38 = vld [vmem:[#allocation4 + $0x70] sm:$0xff] }
 0x57a   :  { %v911_v2 = vmul.f32 %v910_v61, %v893_v43  ;;  %v936_v3 = vmul.f32 %v935_v63, %v933_v55  ;;  %v947_v4 = vmul.f32 %v946_v0, %v933_v55 }
 0x57b   :  { %v900_v15 = vmul.f32 %v899_v7, %v893_v43 }
 0x57c   :  { %v912_v6 = vadd.f32 0.4994258, %v911_v2  ;;  %v948_v9 = vadd.f32 0.014752088, %v947_v4  ;;  %v937_v11 = vadd.f32 0.0036580483, %v936_v3 }
 0x57d   :  { %v901_v23 = vadd.f32 0.18741608, %v900_v15  ;;  %v889_v3 = vmul.f32 0.5, %v2421_v8  ;;  %v983_v8 = vld [vmem:[#allocation4 + $0x78] sm:$0xff] }
 0x57e   :  { %v913_v10 = vmul.f32 %v912_v6, %v893_v43  ;;  %v949_v12 = vmul.f32 %v948_v9, %v933_v55  ;;  %v938_v17 = vmul.f32 %v937_v11, %v933_v55 }
 0x57f   :  { %v902_v28 = vmul.f32 %v901_v23, %v893_v43  ;;  %v1111_v23 = vld [vmem:[#allocation2 + $0x118] sm:$0xff] }
 0x580   :  { %v914_v14 = vadd.f32 1.0, %v913_v10  ;;  %v950_v16 = vadd.f32 0.112945676, %v949_v12  ;;  %v939_v25 = vadd.f32 0.05243302, %v938_v17  ;;  %1124 = vmatpush.msra.mxu0 %v1111_v23 }
 0x581   :  { %v903_v35 = vadd.f32 1.1283791, %v902_v28  ;;  %v1109_v28 = vld [vmem:[#allocation2 + $0x108] sm:$0xff] }
 0x582   :  { %2152 = vrcp.f32 %v914_v14  ;;  %v951_v22 = vmul.f32 %v950_v16, %v933_v55  ;;  %v940_v32 = vmul.f32 %v939_v25, %v933_v55  ;;  %v926_v34 = vand.u32 2147483648, %v914_v14  ;;  %v1076_v25 = vld [vmem:[#allocation2 + $0xf0] sm:$0xff] }
 0x583   :  { %v924_v37 = vand.u32 2147483647, %v914_v14  ;;  %vm920_vm11 = vweird.f32 %v914_v14  ;;  %v904_v46 = vmul.f32 %v903_v35, %v2417_v39  ;;  %v1136_v35 = vld [vmem:[#allocation2 + $0x120] sm:$0xff] }
 0x584   :  { %v952_v24 = vadd.f32 0.4994258, %v951_v22  ;;  %v941_v41 = vadd.f32 0.18741608, %v940_v32  ;;  %v927_v44 = vor.u32 1.1754944e-38, %v926_v34  ;;  %v1077_v22 = vld [vmem:[#allocation2 + $0xf8] sm:$0xff] }
 0x585   :  { %vm925_vm13 = vcmp.eq.f32.partialorder %v924_v37, 8.507059e+37  ;;  %1096 = vmatpush.msrb.mxu3 %v1077_v22  ;;  %v1108_v34 = vld [vmem:[#allocation2 + $0x100] sm:$0xff] }
 0x586   :  { %v953_v26 = vmul.f32 %v952_v24, %v933_v55  ;;  %v942_v49 = vmul.f32 %v941_v41, %v933_v55  ;;  %v1139_v24 = vld [vmem:[#allocation2 + $0x138] sm:$0xff] }
 0x587   :  { %1152 = vmatpush.msra.mxu1 %v1139_v24  ;;  %1097 = vmatpush.msrb.mxu3 %v1076_v25 }
 0x588   :  { %v2153_v27 = vpop.eup %2152  ;;  %v954_v30 = vadd.f32 1.0, %v953_v26  ;;  %v943_v56 = vadd.f32 1.1283791, %v942_v49  ;;  %v1110_v26 = vld [vmem:[#allocation2 + $0x110] sm:$0xff] }
 0x589   :  { %v916_v29 = vmul.f32 %v2153_v27, %v914_v14  ;;  %vm921_vm10 = vweird.f32 %v2153_v27  ;;  %1125 = vmatpush.msra.mxu0 %v1110_v26 }
 0x58a   :  { %2154 = vrcp.f32 %v954_v30  ;;  %vm922_vm12 = vmor %vm920_vm11, %vm921_vm10  ;;  %v966_v13 = vand.u32 2147483648, %v954_v30  ;;  %v964_v58 = vand.u32 2147483647, %v954_v30  ;;  %vm960_vm15 = vweird.f32 %v954_v30 }
 0x58b   :  { %v917_v33 = vsub.f32 1.0, %v916_v29  ;;  %v944_v63 = vmul.f32 %v943_v56, %v2424_v50  ;;  %v1137_v29 = vld [vmem:[#allocation2 + $0x128] sm:$0xff]  ;;  %1126 = vmatpush.msra.mxu0 %v1109_v28 }
 0x58c   :  { %v967_v39 = vor.u32 1.1754944e-38, %v966_v13  ;;  %vm965_vm2 = vcmp.eq.f32.partialorder %v964_v58, 8.507059e+37 }
 0x58d   :  { %v918_v36 = vmul.f32 %v2153_v27, %v917_v33  ;;  %v1074_v33 = vld [vmem:[#allocation2 + $0xe0] sm:$0xff]  ;;  %1127 = vmatpush.msra.mxu0 %v1108_v34 }
 0x58f   :  { %v919_v42 = vadd.f32 %v2153_v27, %v918_v36 }
 0x590   :  { %v2155_v45 = vpop.eup %2154 }
 0x591   :  { %v923_v48 = vsel %vm922_vm12, %v2153_v27, %v919_v42  ;;  %v956_v51 = vmul.f32 %v2155_v45, %v954_v30  ;;  %vm961_vm14 = vweird.f32 %v2155_v45  ;;  %v1075_v27 = vld [vmem:[#allocation2 + $0xe8] sm:$0xff] }
 0x592   :  { %v928_v43 = vsel %vm925_vm13, %v927_v44, %v923_v48  ;;  %vm962_vm1 = vmor %vm960_vm15, %vm961_vm14  ;;  %1098 = vmatpush.msrb.mxu3 %v1075_v27 }
 0x593   :  { %v929_v52 = vmul.f32 %v928_v43, %v904_v46  ;;  %v957_v53 = vsub.f32 1.0, %v956_v51 }
 0x594   :  { %1099 = vmatpush.msrb.mxu3 %v1074_v33 }
 0x595   :  { %v2060_v54 = vclamps-f32 %v929_v52, 1.0  ;;  %v958_v57 = vmul.f32 %v2155_v45, %v957_v53 }
 0x597   :  { %v972_v60 = vadd.f32 1.0, %v2060_v54  ;;  %v959_v61 = vadd.f32 %v2155_v45, %v958_v57 }
 0x599   :  { %v974_v62 = vmul.f32 %v972_v60, %v888_v59  ;;  %v963_v55 = vsel %vm962_vm1, %v2155_v45, %v959_v61 }
 0x59a   :  { %v968_v0 = vsel %vm965_vm2, %v967_v39, %v963_v55 }
 0x59b   :  { %2062 = vmatmul.msk.f32.vlgmr.msrb.gmra.mxu2 %vm54_vm0, %v974_v62  ;;  %v969_v1 = vmul.f32 %v968_v0, %v944_v63  ;;  %v1016_v62 = vld [vmem:[#allocation4 + $0x80] sm:$0xff]  ;;  %v1019_v0 = vld [vmem:[#allocation4 + $0x90] sm:$0xff] }
 0x59d   :  { %v2061_v2 = vclamps-f32 %v969_v1, 1.0 }
 0x59f   :  { %v973_v4 = vadd.f32 1.0, %v2061_v2 }
 0x5a1   :  { %v975_v5 = vmul.f32 %v973_v4, %v889_v3 }
 0x5a3   :  { %2063 = vmatmul.msk.f32.gmra.mxu2 %vm54_vm0, %v975_v5 }
 0x61e   :  { %v1007_v6 = vpop.f32.mrf.mxu2 }
 0x61f   :  { %v1008_v7 = vadd.f32 %v1007_v6, %v982_v38  ;;  %v1017_v6 = vld [vmem:[#allocation4 + $0x88] sm:$0xff] }
 0x621   :  { %v2435_v9 = vadd.f32 %v1008_v7, %v2391_v40 }
 0x623   :  { %v1021_v50 = vsel %vm54_vm0, %v2435_v9, 0.0  ;;  %v1029_v10 = vmul.f32 %v2435_v9, %v2435_v9 }
 0x624   :  { %1022 = vadd.xlane.f32.xlu0 %v1021_v50 }
 0x625   :  { %v1031_v11 = vsel %vm54_vm0, %v1029_v10, 0.0  ;;  %v1020_v10 = vld [vmem:[#allocation4 + $0x98] sm:$0xff] }
 0x626   :  { %1032 = vadd.xlane.f32.xlu1 %v1031_v11  ;;  %v1010_v12 = vpop.f32.mrf.mxu2 }
 0x627   :  { %v1011_v14 = vadd.f32 %v1010_v12, %v983_v8 }
 0x629   :  { %v2443_v15 = vadd.f32 %v1011_v14, %v2399_v47  ;;  %v1138_v47 = vld [vmem:[#allocation2 + $0x130] sm:$0xff] }
 0x62a   :  { %1153 = vmatpush.msra.mxu1 %v1138_v47 }
 0x62b   :  { %v1024_v40 = vsel %vm54_vm0, %v2443_v15, 0.0  ;;  %v1030_v16 = vmul.f32 %v2443_v15, %v2443_v15 }
 0x62c   :  { %1025 = vadd.xlane.f32.xlu2 %v1024_v40  ;;  %1154 = vmatpush.msra.mxu1 %v1137_v29 }
 0x62d   :  { %v1034_v17 = vsel %vm54_vm0, %v1030_v16, 0.0 }
 0x62e   :  { %1035 = vadd.xlane.f32.xlu0 %v1034_v17  ;;  %1155 = vmatpush.msra.mxu1 %v1136_v35 }
 0x697   :  { %v1023_v30 = vpop.xlane.xlu0 %1022 }
 0x698   :  { %v1027_v32 = vmul.f32 %v1023_v30, %v2310_v31 }
 0x699   :  { %v1033_v36 = vpop.xlane.xlu1 %1032 }
 0x69a   :  { %v1039_v37 = vmul.f32 %v1027_v32, %v1027_v32  ;;  %v1037_v41 = vmul.f32 %v1033_v36, %v2310_v31  ;;  %v1043_v60 = vsub.f32 %v2435_v9, %v1027_v32 }
 0x69c   :  { %v1041_v42 = vsub.f32 %v1037_v41, %v1039_v37 }
 0x69e   :  { %v1045_v44 = vadd.f32 1e-05, %v1041_v42 }
 0x69f   :  { %v1026_v45 = vpop.xlane.xlu2 %1025 }
 0x6a0   :  { %2156 = vrsqrt.f32 %v1045_v44  ;;  %v1028_v46 = vmul.f32 %v1026_v45, %v2310_v31  ;;  %vm1053_vm5 = vweird.f32 %v1045_v44 }
 0x6a1   :  { %v1036_v48 = vpop.xlane.xlu0 %1035 }
 0x6a2   :  { %v1040_v43 = vmul.f32 %v1028_v46, %v1028_v46  ;;  %v1038_v49 = vmul.f32 %v1036_v48, %v2310_v31  ;;  %v1044_v38 = vsub.f32 %v2443_v15, %v1028_v46 }
 0x6a4   :  { %v1042_v51 = vsub.f32 %v1038_v49, %v1040_v43 }
 0x6a6   :  { %v2157_v52 = vpop.eup %2156  ;;  %v1046_v54 = vadd.f32 1e-05, %v1042_v51 }
 0x6a7   :  { %v1048_v53 = vmul.f32 %v2157_v52, %v1045_v44  ;;  %vm1054_vm4 = vweird.f32 %v2157_v52 }
 0x6a8   :  { %2158 = vrsqrt.f32 %v1046_v54  ;;  %vm1055_vm6 = vmor %vm1053_vm5, %vm1054_vm4  ;;  %vm1063_vm8 = vweird.f32 %v1046_v54 }
 0x6a9   :  { %v1049_v13 = vmul.f32 %v2157_v52, %v1048_v53 }
 0x6ab   :  { %v1050_v56 = vmul.f32 0.5, %v1049_v13 }
 0x6ad   :  { %v1051_v57 = vsub.f32 1.5, %v1050_v56 }
 0x6ae   :  { %v2159_v58 = vpop.eup %2158 }
 0x6af   :  { %v1052_v59 = vmul.f32 %v2157_v52, %v1051_v57  ;;  %v1058_v61 = vmul.f32 %v2159_v58, %v1046_v54  ;;  %vm1064_vm7 = vweird.f32 %v2159_v58 }
 0x6b0   :  { %vm1065_vm9 = vmor %vm1063_vm8, %vm1064_vm7 }
 0x6b1   :  { %v1056_v39 = vsel %vm1055_vm6, %v2157_v52, %v1052_v59  ;;  %v1059_v55 = vmul.f32 %v2159_v58, %v1058_v61 }
 0x6b2   :  { %v1067_v63 = vmul.f32 %v1056_v39, %v1043_v60 }
 0x6b3   :  { %v1060_v2 = vmul.f32 0.5, %v1059_v55 }
 0x6b4   :  { %v1069_v1 = vmul.f32 %v1067_v63, %v1016_v62 }
 0x6b5   :  { %v1061_v3 = vsub.f32 1.5, %v1060_v2 }
 0x6b6   :  { %v1071_v4 = vadd.f32 %v1069_v1, %v1019_v0 }
 0x6b7   :  { %v1062_v5 = vmul.f32 %v2159_v58, %v1061_v3 }
 0x6b8   :  { %2064 = vmatmul.msk.f32.vlgmr.msrb.gmra.mxu3 %vm54_vm0, %v1071_v4  ;;  %2066 = vmatmul.msk.f32.vlgmr.msra.gmra.mxu0 %vm54_vm0, %v1071_v4 }
 0x6b9   :  { %2068 = vmatmul.msk.f32.vlgmr.msra.gmra.mxu1 %vm54_vm0, %v1071_v4  ;;  %v1066_v7 = vsel %vm1065_vm9, %v2159_v58, %v1062_v5 }
 0x6ba   :  { %v1068_v50 = vmul.f32 %v1066_v7, %v1044_v38 }
 0x6bc   :  { %v1070_v11 = vmul.f32 %v1068_v50, %v1017_v6 }
 0x6be   :  { %v1072_v8 = vadd.f32 %v1070_v11, %v1020_v10 }
 0x6c0   :  { %2065 = vmatmul.msk.f32.gmra.mxu3 %vm54_vm0, %v1072_v8  ;;  %2067 = vmatmul.msk.f32.gmra.mxu0 %vm54_vm0, %v1072_v8 }
 0x6c1   :  { %2069 = vmatmul.msk.f32.gmra.mxu1 %vm54_vm0, %v1072_v8 }
 0x735   :  { %v1129_v12 = vpop.f32.mrf.mxu0 }
 0x736   :  { %v1163_v14 = vmul.f32 %v2328_v20, %v1129_v12  ;;  %v1165_v40 = vmul.f32 %v2330_v21, %v1129_v12  ;;  %v1167_v16 = vmul.f32 %v2324_v18, %v1129_v12  ;;  %v1157_v17 = vpop.f32.mrf.mxu1  ;;  %v1169_v23 = vmul.f32 %v2326_v19, %v1129_v12 }
 0x737   :  { %v1171_v22 = vmul.f32 %v2328_v20, %v1157_v17  ;;  %v1175_v24 = vmul.f32 %v2324_v18, %v1157_v17  ;;  %v1173_v32 = vmul.f32 %v2330_v21, %v1157_v17 }
 0x738   :  { %2070 = vmatpush.xpose.msk.msra.mxu2 %vm54_vm0, %v1163_v14  ;;  %2078 = vmatpush.xpose.msk.msrb.mxu0 %vm54_vm0, %v1167_v16 }
 0x73b   :  { %v1101_v25 = vpop.f32.mrf.mxu3 }
 0x73c   :  { %2074 = vmatpush.xpose.msk.msrb.mxu2 %vm54_vm0, %v1165_v40  ;;  %1483 = vmatpush.msra.mxu0 %v1171_v22 }
 0x73d   :  { %2071 = vmatmul.msk.f32.vlgmr.msra.gmra.mxu2 %vm54_vm0, %v1101_v25  ;;  %2079 = vmatmul.msk.f32.vlgmr.msrb.gmra.mxu0 %vm54_vm0, %v1101_v25  ;;  %v1132_v26 = vpop.f32.mrf.mxu0 }
 0x73e   :  { %1575 = vmatpush.msrb.mxu0 %v1175_v24  ;;  %v1164_v47 = vmul.f32 %v2328_v20, %v1132_v26  ;;  %v1166_v27 = vmul.f32 %v2330_v21, %v1132_v26  ;;  %v1168_v28 = vmul.f32 %v2324_v18, %v1132_v26  ;;  %v1160_v29 = vpop.f32.mrf.mxu1  ;;  %v1170_v33 = vmul.f32 %v2326_v19, %v1132_v26 }
 0x73f   :  { %v1172_v30 = vmul.f32 %v2328_v20, %v1160_v29  ;;  %v1176_v35 = vmul.f32 %v2324_v18, %v1160_v29  ;;  %v1177_v20 = vmul.f32 %v2326_v19, %v1157_v17  ;;  %v1174_v36 = vmul.f32 %v2330_v21, %v1160_v29 }
 0x740   :  { %2082 = vmatpush.xpose.msk.msra.mxu2 %vm54_vm0, %v1169_v23  ;;  %2072 = vmatpush.xpose.msk.msra.mxu3 %vm54_vm0, %v1164_v47  ;;  %v1178_v18 = vmul.f32 %v2326_v19, %v1160_v29 }
 0x741   :  { %2080 = vmatpush.xpose.msk.msrb.mxu1 %vm54_vm0, %v1168_v28 }
 0x743   :  { %v1104_v34 = vpop.f32.mrf.mxu3 }
 0x744   :  { %2076 = vmatpush.xpose.msk.msrb.mxu3 %vm54_vm0, %v1166_v27  ;;  %2081 = vmatmul.msk.f32.vlgmr.msrb.gmra.mxu1 %vm54_vm0, %v1104_v34 }
 0x745   :  { %1506 = vmatpush.msra.mxu1 %v1172_v30  ;;  %2075 = vmatmul.msk.f32.vlgmr.msrb.gmra.mxu2 %vm54_vm0, %v1101_v25 }
 0x746   :  { %2073 = vmatmul.msk.f32.vlgmr.msra.gmra.mxu3 %vm54_vm0, %v1104_v34  ;;  %1529 = vmatpush.msrb.mxu2 %v1173_v32 }
 0x747   :  { %1598 = vmatpush.msrb.mxu1 %v1176_v35 }
 0x748   :  { %2084 = vmatpush.xpose.msk.msra.mxu3 %vm54_vm0, %v1170_v33 }
 0x74d   :  { %2083 = vmatmul.msk.f32.vlgmr.msra.gmra.mxu2 %vm54_vm0, %v1101_v25 }
 0x74e   :  { %2077 = vmatmul.msk.f32.vlgmr.msrb.gmra.mxu3 %vm54_vm0, %v1104_v34  ;;  %1621 = vmatpush.msra.mxu2 %v1177_v20 }
 0x74f   :  { %1552 = vmatpush.msrb.mxu3 %v1174_v36 }
 0x756   :  { %2085 = vmatmul.msk.f32.vlgmr.msra.gmra.mxu3 %vm54_vm0, %v1104_v34 }
 0x757   :  { %1644 = vmatpush.msra.mxu3 %v1178_v18 }
 0x7ba   :  { %v1297_v58 = vpop.f32.mrf.mxu0 }
 0x7bb   :  { %v1373_v59 = vmul.f32 0.35355338, %v1297_v58 }
 0x7bd   :  { %v1389_v62 = vsel %vm475_vm3, %v1373_v59, -inf }
 0x7c0   :  { %v1202_v37 = vpop.f32.mrf.mxu2 }
 0x7c1   :  { %v1369_v41 = vmul.f32 0.35355338, %v1202_v37  ;;  %v1320_v49 = vpop.f32.mrf.mxu1 }
 0x7c2   :  { %v1374_v19 = vmul.f32 0.35355338, %v1320_v49 }
 0x7c3   :  { %v1377_v42 = vsel %vm475_vm3, %v1369_v41, -inf }
 0x7c4   :  { %1378 = vmax.xlane.f32.xlu2 %v1377_v42  ;;  %v1392_v56 = vsel %vm475_vm3, %v1374_v19, -inf }
 0x7c8   :  { %v1251_v44 = vpop.f32.mrf.mxu2 }
 0x7c9   :  { %v1228_v45 = vpop.f32.mrf.mxu3  ;;  %v1371_v46 = vmul.f32 0.35355338, %v1251_v44 }
 0x7ca   :  { %v1370_v21 = vmul.f32 0.35355338, %v1228_v45 }
 0x7cb   :  { %v1383_v48 = vsel %vm475_vm3, %v1371_v46, -inf }
 0x7cc   :  { %1384 = vmax.xlane.f32.xlu1 %v1383_v48  ;;  %v1380_v43 = vsel %vm475_vm3, %v1370_v21, -inf }
 0x7cd   :  { %1381 = vmax.xlane.f32.xlu2 %v1380_v43 }
 0x7d0   :  { %v1343_v51 = vpop.f32.mrf.mxu2 }
 0x7d1   :  { %v1274_v52 = vpop.f32.mrf.mxu3  ;;  %v1375_v53 = vmul.f32 0.35355338, %v1343_v51 }
 0x7d2   :  { %v1372_v54 = vmul.f32 0.35355338, %v1274_v52 }
 0x7d3   :  { %v1395_v13 = vsel %vm475_vm3, %v1375_v53, -inf }
 0x7d4   :  { %1396 = vmax.xlane.f32.xlu1 %v1395_v13  ;;  %v1386_v57 = vsel %vm475_vm3, %v1372_v54, -inf }
 0x7d5   :  { %1393 = vmax.xlane.f32.xlu2 %v1392_v56  ;;  %1387 = vmax.xlane.f32.xlu0 %v1386_v57 }
 0x7d9   :  { %v1366_v60 = vpop.f32.mrf.mxu3 }
 0x7da   :  { %v1376_v61 = vmul.f32 0.35355338, %v1366_v60 }
 0x7dc   :  { %v1398_v39 = vsel %vm475_vm3, %v1376_v61, -inf }
 0x7dd   :  { %1390 = vmax.xlane.f32.xlu0 %v1389_v62  ;;  %1399 = vmax.xlane.f32.xlu1 %v1398_v39 }
 0x837   :  { %v1379_v63 = vpop.xlane.xlu2 %1378 }
 0x838   :  { %v1401_v55 = vsub.f32 %v1369_v41, %v1379_v63 }
 0x83a   :  { %v1409_v0 = vmul.f32 1.442695, %v1401_v55 }
 0x83c   :  { %2160 = vpow2.f32 %v1409_v0 }
 0x83f   :  { %v1385_v1 = vpop.xlane.xlu1 %1384 }
 0x840   :  { %v1403_v2 = vsub.f32 %v1371_v46, %v1385_v1  ;;  %v1382_v3 = vpop.xlane.xlu2 %1381  ;;  %v1659_v1 = vld [vmem:[#allocation2 + $0x158] sm:$0xff] }
 0x841   :  { %v1402_v4 = vsub.f32 %v1370_v21, %v1382_v3  ;;  %v1657_v3 = vld [vmem:[#allocation2 + $0x148] sm:$0xff] }
 0x842   :  { %v2161_v5 = vpop.eup %2160  ;;  %v1413_v38 = vmul.f32 1.442695, %v1403_v2  ;;  %v1658_v2 = vld [vmem:[#allocation2 + $0x150] sm:$0xff] }
 0x843   :  { %v1411_v6 = vmul.f32 1.442695, %v1402_v4  ;;  %v1425_v7 = vsel %vm475_vm3, %v2161_v5, 0.0  ;;  %v1656_v4 = vld [vmem:[#allocation2 + $0x140] sm:$0xff] }
 0x844   :  { %2162 = vpow2.f32 %v1413_v38  ;;  %1426 = vadd.xlane.f32.xlu1 %v1425_v7 }
 0x845   :  { %2164 = vpow2.f32 %v1411_v6 }
 0x847   :  { %v1397_v50 = vpop.xlane.xlu1 %1396 }
 0x848   :  { %v1407_v10 = vsub.f32 %v1375_v53, %v1397_v50  ;;  %v1388_v11 = vpop.xlane.xlu0 %1387  ;;  %v1394_v8 = vpop.xlane.xlu2 %1393 }
 0x849   :  { %v1404_v12 = vsub.f32 %v1372_v54, %v1388_v11  ;;  %v1406_v14 = vsub.f32 %v1374_v19, %v1394_v8 }
 0x84a   :  { %v2163_v40 = vpop.eup %2162  ;;  %v1421_v16 = vmul.f32 1.442695, %v1407_v10 }
 0x84b   :  { %v2165_v17 = vpop.eup %2164  ;;  %v1415_v22 = vmul.f32 1.442695, %v1404_v12  ;;  %v1419_v23 = vmul.f32 1.442695, %v1406_v14  ;;  %v1431_v24 = vsel %vm475_vm3, %v2163_v40, 0.0 }
 0x84c   :  { %2166 = vpow2.f32 %v1421_v16  ;;  %1432 = vadd.xlane.f32.xlu0 %v1431_v24  ;;  %v1428_v25 = vsel %vm475_vm3, %v2165_v17, 0.0 }
 0x84d   :  { %2168 = vpow2.f32 %v1415_v22  ;;  %1429 = vadd.xlane.f32.xlu1 %v1428_v25 }
 0x84e   :  { %2170 = vpow2.f32 %v1419_v23  ;;  %v1661_v23 = vld [vmem:[#allocation4 + $0xa0] sm:$0xff] }
 0x850   :  { %v1391_v26 = vpop.xlane.xlu0 %1390  ;;  %v1400_v47 = vpop.xlane.xlu1 %1399 }
 0x851   :  { %v1405_v27 = vsub.f32 %v1373_v59, %v1391_v26  ;;  %v1408_v28 = vsub.f32 %v1376_v61, %v1400_v47 }
 0x852   :  { %v2167_v29 = vpop.eup %2166 }
 0x853   :  { %v2169_v30 = vpop.eup %2168  ;;  %v1417_v32 = vmul.f32 1.442695, %v1405_v27  ;;  %v1423_v33 = vmul.f32 1.442695, %v1408_v28  ;;  %v1443_v34 = vsel %vm475_vm3, %v2167_v29, 0.0  ;;  %v1662_v28 = vld [vmem:[#allocation4 + $0xa8] sm:$0xff] }
 0x854   :  { %v2171_v35 = vpop.eup %2170  ;;  %1444 = vadd.xlane.f32.xlu0 %v1443_v34  ;;  %v1434_v20 = vsel %vm475_vm3, %v2169_v30, 0.0 }
 0x855   :  { %2172 = vpow2.f32 %v1417_v32  ;;  %1435 = vadd.xlane.f32.xlu2 %v1434_v20  ;;  %v1440_v36 = vsel %vm475_vm3, %v2171_v35, 0.0  ;;  %v1756_v20 = vld [vmem:[#allocation2 + $0x178] sm:$0xff] }
 0x856   :  { %2174 = vpow2.f32 %v1423_v33  ;;  %1441 = vadd.xlane.f32.xlu1 %v1440_v36  ;;  %v1755_v36 = vld [vmem:[#allocation2 + $0x170] sm:$0xff] }
 0x85b   :  { %v2173_v18 = vpop.eup %2172 }
 0x85c   :  { %v2175_v37 = vpop.eup %2174  ;;  %v1437_v41 = vsel %vm475_vm3, %v2173_v18, 0.0 }
 0x85d   :  { %1438 = vadd.xlane.f32.xlu2 %v1437_v41  ;;  %v1446_v42 = vsel %vm475_vm3, %v2175_v37, 0.0  ;;  %v1753_v41 = vld [vmem:[#allocation2 + $0x160] sm:$0xff] }
 0x85e   :  { %1447 = vadd.xlane.f32.xlu0 %v1446_v42 }
 0x8b7   :  { %v1427_v44 = vpop.xlane.xlu1 %1426 }
 0x8b8   :  { %2176 = vrcp.f32 %v1427_v44 }
 0x8be   :  { %v2177_v45 = vpop.eup %2176 }
 0x8bf   :  { %v1457_v46 = vmul.f32 %v2177_v45, %v2161_v5  ;;  %v1433_v21 = vpop.xlane.xlu0 %1432 }
 0x8c0   :  { %2178 = vrcp.f32 %v1433_v21  ;;  %v1430_v48 = vpop.xlane.xlu1 %1429 }
 0x8c1   :  { %2180 = vrcp.f32 %v1430_v48  ;;  %2086 = vmatmul.msk.f32.vlgmr.msra.gmra.mxu0 %vm475_vm3, %v1457_v46 }
 0x8c2   :  { %1681 = vmatpush.msra.mxu0 %v1659_v1 }
 0x8c4   :  { %1682 = vmatpush.msra.mxu0 %v1658_v2  ;;  %v1698_v2 = vld [vmem:[#allocation4 + $0xc0] sm:$0xff] }
 0x8c6   :  { %v2179_v43 = vpop.eup %2178  ;;  %1683 = vmatpush.msra.mxu0 %v1657_v3 }
 0x8c7   :  { %v2181_v49 = vpop.eup %2180  ;;  %v1459_v19 = vmul.f32 %v2179_v43, %v2163_v40  ;;  %v1445_v51 = vpop.xlane.xlu0 %1444 }
 0x8c8   :  { %v1458_v52 = vmul.f32 %v2181_v49, %v2165_v17  ;;  %2182 = vrcp.f32 %v1445_v51  ;;  %v1436_v53 = vpop.xlane.xlu2 %1435  ;;  %1684 = vmatpush.msra.mxu0 %v1656_v4 }
 0x8c9   :  { %v1442_v54 = vpop.xlane.xlu1 %1441  ;;  %2184 = vrcp.f32 %v1436_v53  ;;  %2088 = vmatmul.msk.f32.vlgmr.msrb.gmra.mxu2 %vm475_vm3, %v1459_v19 }
 0x8ca   :  { %2186 = vrcp.f32 %v1442_v54  ;;  %2087 = vmatmul.msk.f32.vlgmr.msra.gmra.mxu1 %vm475_vm3, %v1458_v52 }
 0x8cb   :  { %1778 = vmatpush.msra.mxu1 %v1756_v20 }
 0x8cd   :  { %1779 = vmatpush.msra.mxu1 %v1755_v36 }
 0x8ce   :  { %v2183_v13 = vpop.eup %2182 }
 0x8cf   :  { %v2185_v56 = vpop.eup %2184  ;;  %v1463_v57 = vmul.f32 %v2183_v13, %v2167_v29 }
 0x8d0   :  { %v2187_v58 = vpop.eup %2186  ;;  %v1460_v59 = vmul.f32 %v2185_v56, %v2169_v30  ;;  %v1439_v60 = vpop.xlane.xlu2 %1438 }
 0x8d1   :  { %v1462_v61 = vmul.f32 %v2187_v58, %v2171_v35  ;;  %v1448_v62 = vpop.xlane.xlu0 %1447  ;;  %2188 = vrcp.f32 %v1439_v60  ;;  %2092 = vmatmul.msk.f32.vlgmr.msra.gmra.mxu2 %vm475_vm3, %v1463_v57 }
 0x8d2   :  { %2190 = vrcp.f32 %v1448_v62  ;;  %2089 = vmatmul.msk.f32.vlgmr.msrb.gmra.mxu3 %vm475_vm3, %v1460_v59 }
 0x8d3   :  { %2091 = vmatmul.msk.f32.vlgmr.msrb.gmra.mxu1 %vm475_vm3, %v1462_v61 }
 0x8d7   :  { %v2189_v39 = vpop.eup %2188 }
 0x8d8   :  { %v2191_v63 = vpop.eup %2190  ;;  %v1461_v55 = vmul.f32 %v2189_v39, %v2173_v18  ;;  %v1754_v18 = vld [vmem:[#allocation2 + $0x168] sm:$0xff]  ;;  %v1695_v39 = vld [vmem:[#allocation4 + $0xb0] sm:$0xff] }
 0x8d9   :  { %v1464_v0 = vmul.f32 %v2191_v63, %v2175_v37  ;;  %1780 = vmatpush.msra.mxu1 %v1754_v18 }
 0x8da   :  { %2090 = vmatmul.msk.f32.vlgmr.msrb.gmra.mxu0 %vm475_vm3, %v1461_v55 }
 0x8db   :  { %2093 = vmatmul.msk.f32.vlgmr.msra.gmra.mxu3 %vm475_vm3, %v1464_v0  ;;  %1781 = vmatpush.msra.mxu1 %v1753_v41 }
 0x93e   :  { %v1485_v5 = vpop.f32.mrf.mxu0 }
 0x947   :  { %v1508_v6 = vpop.f32.mrf.mxu1 }
 0x94c   :  { %v1531_v38 = vpop.f32.mrf.mxu2 }
 0x94d   :  { %v1649_v50 = vadd.f32 %v1531_v38, %v1485_v5 }
 0x950   :  { %v1600_v40 = vpop.f32.mrf.mxu1 }
 0x954   :  { %v1623_v8 = vpop.f32.mrf.mxu2 }
 0x955   :  { %v1554_v7 = vpop.f32.mrf.mxu3 }
 0x956   :  { %v1650_v14 = vadd.f32 %v1554_v7, %v1508_v6  ;;  %v1696_v7 = vld [vmem:[#allocation4 + $0xb8] sm:$0xff] }
 0x957   :  { %v1577_v10 = vpop.f32.mrf.mxu0 }
 0x958   :  { %v1651_v11 = vadd.f32 %v1649_v50, %v1577_v10  ;;  %v1652_v17 = vadd.f32 %v1650_v14, %v1600_v40  ;;  %v1758_v14 = vld [vmem:[#allocation4 + $0xd0] sm:$0xff] }
 0x95a   :  { %v1653_v12 = vadd.f32 %v1651_v11, %v1623_v8  ;;  %v1699_v11 = vld [vmem:[#allocation4 + $0xc8] sm:$0xff] }
 0x95c   :  { %2094 = vmatmul.msk.f32.vlgmr.msra.gmra.mxu0 %vm54_vm0, %v1653_v12 }
 0x95e   :  { %v1646_v16 = vpop.f32.mrf.mxu3 }
 0x95f   :  { %v1654_v22 = vadd.f32 %v1652_v17, %v1646_v16 }
 0x964   :  { %2095 = vmatmul.msk.f32.gmra.mxu0 %vm54_vm0, %v1654_v22 }
 0x9d9   :  { %v1686_v24 = vpop.f32.mrf.mxu0 }
 0x9da   :  { %v1687_v25 = vadd.f32 %v1686_v24, %v1661_v23  ;;  %v1759_v23 = vld [vmem:[#allocation4 + $0xd8] sm:$0xff] }
 0x9dc   :  { %v2521_v26 = vadd.f32 %v1687_v25, %v2435_v9 }
 0x9de   :  { %v1700_v47 = vsel %vm54_vm0, %v2521_v26, 0.0  ;;  %v1708_v27 = vmul.f32 %v2521_v26, %v2521_v26 }
 0x9df   :  { %1701 = vadd.xlane.f32.xlu2 %v1700_v47 }
 0x9e0   :  { %v1710_v29 = vsel %vm54_vm0, %v1708_v27, 0.0 }
 0x9e1   :  { %v1689_v30 = vpop.f32.mrf.mxu0  ;;  %1711 = vadd.xlane.f32.xlu0 %v1710_v29 }
 0x9e2   :  { %v1690_v32 = vadd.f32 %v1689_v30, %v1662_v28 }
 0x9e4   :  { %v2529_v33 = vadd.f32 %v1690_v32, %v2443_v15 }
 0x9e6   :  { %v1703_v9 = vsel %vm54_vm0, %v2529_v33, 0.0  ;;  %v1709_v34 = vmul.f32 %v2529_v33, %v2529_v33 }
 0x9e7   :  { %1704 = vadd.xlane.f32.xlu1 %v1703_v9 }
 0x9e8   :  { %v1713_v35 = vsel %vm54_vm0, %v1709_v34, 0.0 }
 0x9e9   :  { %1714 = vadd.xlane.f32.xlu2 %v1713_v35 }
 0xa52   :  { %v1702_v37 = vpop.xlane.xlu2 %1701 }
 0xa53   :  { %v1706_v15 = vmul.f32 %v1702_v37, %v2310_v31  ;;  %v1881_v37 = vld [vmem:[#allocation2 + $0x198] sm:$0xff] }
 0xa54   :  { %v1712_v42 = vpop.xlane.xlu0 %1711  ;;  %1903 = vmatpush.msrb.mxu2 %v1881_v37 }
 0xa55   :  { %v1718_v44 = vmul.f32 %v1706_v15, %v1706_v15  ;;  %v1716_v45 = vmul.f32 %v1712_v42, %v2310_v31  ;;  %v1722_v62 = vsub.f32 %v2521_v26, %v1706_v15 }
 0xa57   :  { %v1720_v46 = vsub.f32 %v1716_v45, %v1718_v44  ;;  %v1880_v44 = vld [vmem:[#allocation2 + $0x190] sm:$0xff] }
 0xa58   :  { %1904 = vmatpush.msrb.mxu2 %v1880_v44 }
 0xa59   :  { %v1724_v21 = vadd.f32 1e-05, %v1720_v46 }
 0xa5a   :  { %v1705_v48 = vpop.xlane.xlu1 %1704 }
 0xa5b   :  { %2192 = vrsqrt.f32 %v1724_v21  ;;  %v1707_v43 = vmul.f32 %v1705_v48, %v2310_v31  ;;  %vm1732_vm10 = vweird.f32 %v1724_v21 }
 0xa5c   :  { %v1715_v49 = vpop.xlane.xlu2 %1714 }
 0xa5d   :  { %v1719_v19 = vmul.f32 %v1707_v43, %v1707_v43  ;;  %v1717_v51 = vmul.f32 %v1715_v49, %v2310_v31  ;;  %v1723_v6 = vsub.f32 %v2529_v33, %v1707_v43  ;;  %v1879_v43 = vld [vmem:[#allocation2 + $0x188] sm:$0xff] }
 0xa5e   :  { %1905 = vmatpush.msrb.mxu2 %v1879_v43 }
 0xa5f   :  { %v1721_v52 = vsub.f32 %v1717_v51, %v1719_v19 }
 0xa61   :  { %v2193_v53 = vpop.eup %2192  ;;  %v1725_v54 = vadd.f32 1e-05, %v1721_v52  ;;  %v1878_v52 = vld [vmem:[#allocation2 + $0x180] sm:$0xff] }
 0xa62   :  { %v1727_v13 = vmul.f32 %v2193_v53, %v1724_v21  ;;  %vm1733_vm3 = vweird.f32 %v2193_v53  ;;  %1906 = vmatpush.msrb.mxu2 %v1878_v52 }
 0xa63   :  { %2194 = vrsqrt.f32 %v1725_v54  ;;  %vm1734_vm11 = vmor %vm1732_vm10, %vm1733_vm3  ;;  %vm1742_vm13 = vweird.f32 %v1725_v54 }
 0xa64   :  { %v1728_v56 = vmul.f32 %v2193_v53, %v1727_v13 }
 0xa66   :  { %v1729_v57 = vmul.f32 0.5, %v1728_v56 }
 0xa68   :  { %v1730_v58 = vsub.f32 1.5, %v1729_v57 }
 0xa69   :  { %v2195_v59 = vpop.eup %2194 }
 0xa6a   :  { %v1731_v60 = vmul.f32 %v2193_v53, %v1730_v58  ;;  %v1737_v61 = vmul.f32 %v2195_v59, %v1725_v54  ;;  %vm1743_vm12 = vweird.f32 %v2195_v59 }
 0xa6b   :  { %vm1744_vm14 = vmor %vm1742_vm13, %vm1743_vm12 }
 0xa6c   :  { %v1735_v63 = vsel %vm1734_vm11, %v2193_v53, %v1731_v60  ;;  %v1738_v55 = vmul.f32 %v2195_v59, %v1737_v61 }
 0xa6d   :  { %v1746_v0 = vmul.f32 %v1735_v63, %v1722_v62 }
 0xa6e   :  { %v1739_v1 = vmul.f32 0.5, %v1738_v55 }
 0xa6f   :  { %v1748_v3 = vmul.f32 %v1746_v0, %v1695_v39 }
 0xa70   :  { %v1740_v4 = vsub.f32 1.5, %v1739_v1 }
 0xa71   :  { %v1750_v5 = vadd.f32 %v1748_v3, %v1698_v2 }
 0xa72   :  { %v1741_v38 = vmul.f32 %v2195_v59, %v1740_v4 }
 0xa73   :  { %2096 = vmatmul.msk.f32.vlgmr.msra.gmra.mxu1 %vm54_vm0, %v1750_v5 }
 0xa74   :  { %v1745_v50 = vsel %vm1744_vm14, %v2195_v59, %v1741_v38  ;;  %vm2011_vm14 = vcmask 130048  }
 0xa75   :  { %v1747_v10 = vmul.f32 %v1745_v50, %v1723_v6 }
 0xa77   :  { %v1749_v8 = vmul.f32 %v1747_v10, %v1696_v7 }
 0xa79   :  { %v1751_v12 = vadd.f32 %v1749_v8, %v1699_v11 }
 0xa7b   :  { %2097 = vmatmul.msk.f32.gmra.mxu1 %vm54_vm0, %v1751_v12 }
 0xaf0   :  { %v1783_v40 = vpop.f32.mrf.mxu1 }
 0xaf1   :  { %v2544_v16 = vadd.f32 %v1783_v40, %v1758_v14 }
 0xaf3   :  { %v2547_v17 = vmul.f32 0.70710677, %v2544_v16 }
 0xaf5   :  { %v1793_v22 = vmul.f32 %v2547_v17, %v2547_v17 }
 0xaf7   :  { %v1794_v24 = vmin.f32 %v1793_v22, 16.0 }
 0xaf8   :  { %v1786_v25 = vpop.f32.mrf.mxu1 }
 0xaf9   :  { %v1795_v47 = vmul.f32 2.1237322e-06, %v1794_v24  ;;  %v1806_v27 = vmul.f32 3.8918573e-05, %v1794_v24  ;;  %v2551_v28 = vadd.f32 %v1786_v25, %v1759_v23 }
 0xafb   :  { %v1796_v29 = vadd.f32 0.00028619796, %v1795_v47  ;;  %v1807_v30 = vadd.f32 0.001143296, %v1806_v27  ;;  %v2554_v32 = vmul.f32 0.70710677, %v2551_v28 }
 0xafd   :  { %v1797_v9 = vmul.f32 %v1796_v29, %v1794_v24  ;;  %v1808_v34 = vmul.f32 %v1807_v30, %v1794_v24  ;;  %v1833_v35 = vmul.f32 %v2554_v32, %v2554_v32 }
 0xaff   :  { %v1809_v20 = vadd.f32 0.014752088, %v1808_v34  ;;  %v1798_v36 = vadd.f32 0.0036580483, %v1797_v9  ;;  %v1834_v18 = vmin.f32 %v1833_v35, 16.0 }
 0xb01   :  { %v1810_v41 = vmul.f32 %v1809_v20, %v1794_v24  ;;  %v1835_v15 = vmul.f32 2.1237322e-06, %v1834_v18  ;;  %v1846_v42 = vmul.f32 3.8918573e-05, %v1834_v18  ;;  %v1799_v46 = vmul.f32 %v1798_v36, %v1794_v24 }
 0xb02   :  { %v1789_v36 = vmul.f32 0.5, %v2544_v16  ;;  %v1883_v16 = vld [vmem:[#allocation4 + $0xe0] sm:$0xff] }
 0xb03   :  { %v1811_v45 = vadd.f32 0.112945676, %v1810_v41  ;;  %v1836_v21 = vadd.f32 0.00028619796, %v1835_v15  ;;  %v1847_v48 = vadd.f32 0.001143296, %v1846_v42 }
 0xb04   :  { %v1800_v54 = vadd.f32 0.05243302, %v1799_v46 }
 0xb05   :  { %v1812_v49 = vmul.f32 %v1811_v45, %v1794_v24  ;;  %v1837_v19 = vmul.f32 %v1836_v21, %v1834_v18  ;;  %v1848_v51 = vmul.f32 %v1847_v48, %v1834_v18  ;;  %v1790_v21 = vmul.f32 0.5, %v2551_v28 }
 0xb06   :  { %v1801_v60 = vmul.f32 %v1800_v54, %v1794_v24  ;;  %v1884_v54 = vld [vmem:[#allocation4 + $0xe8] sm:$0xff] }
 0xb07   :  { %v1813_v53 = vadd.f32 0.4994258, %v1812_v49  ;;  %v1849_v13 = vadd.f32 0.014752088, %v1848_v51  ;;  %v1838_v57 = vadd.f32 0.0036580483, %v1837_v19 }
 0xb08   :  { %v1802_v63 = vadd.f32 0.18741608, %v1801_v60  ;;  %v1977_v60 = vld [vmem:[#allocation2 + $0x1b0] sm:$0xff] }
 0xb09   :  { %v1814_v56 = vmul.f32 %v1813_v53, %v1794_v24  ;;  %v1850_v58 = vmul.f32 %v1849_v13, %v1834_v18  ;;  %v1839_v62 = vmul.f32 %v1838_v57, %v1834_v18 }
 0xb0a   :  { %v1803_v3 = vmul.f32 %v1802_v63, %v1794_v24  ;;  %v1975_v63 = vld [vmem:[#allocation2 + $0x1a0] sm:$0xff] }
 0xb0b   :  { %v1815_v59 = vadd.f32 1.0, %v1814_v56  ;;  %v1851_v61 = vadd.f32 0.112945676, %v1850_v58  ;;  %v1840_v0 = vadd.f32 0.05243302, %v1839_v62 }
 0xb0c   :  { %v1804_v50 = vadd.f32 1.1283791, %v1803_v3 }
 0xb0d   :  { %2196 = vrcp.f32 %v1815_v59  ;;  %v1852_v39 = vmul.f32 %v1851_v61, %v1834_v18  ;;  %v1841_v38 = vmul.f32 %v1840_v0, %v1834_v18  ;;  %v1827_v7 = vand.u32 2147483648, %v1815_v59  ;;  %v1976_v61 = vld [vmem:[#allocation2 + $0x1a8] sm:$0xff] }
 0xb0e   :  { %v1825_v11 = vand.u32 2147483647, %v1815_v59  ;;  %vm1821_vm1 = vweird.f32 %v1815_v59  ;;  %v1805_v22 = vmul.f32 %v1804_v50, %v2547_v17 }
 0xb0f   :  { %v1853_v55 = vadd.f32 0.4994258, %v1852_v39  ;;  %v1842_v8 = vadd.f32 0.18741608, %v1841_v38  ;;  %v1828_v14 = vor.u32 1.1754944e-38, %v1827_v7 }
 0xb10   :  { %vm1826_vm4 = vcmp.eq.f32.partialorder %v1825_v11, 8.507059e+37 }
 0xb11   :  { %v1854_v1 = vmul.f32 %v1853_v55, %v1834_v18  ;;  %v1843_v25 = vmul.f32 %v1842_v8, %v1834_v18 }
 0xb13   :  { %v2197_v2 = vpop.eup %2196  ;;  %v1855_v5 = vadd.f32 1.0, %v1854_v1  ;;  %v1844_v34 = vadd.f32 1.1283791, %v1843_v25  ;;  %v1917_v25 = vld [vmem:[#allocation4 + $0xf0] sm:$0xff] }
 0xb14   :  { %v1817_v4 = vmul.f32 %v2197_v2, %v1815_v59  ;;  %vm1822_vm15 = vweird.f32 %v2197_v2 }
 0xb15   :  { %2198 = vrcp.f32 %v1855_v5  ;;  %vm1823_vm2 = vmor %vm1821_vm1, %vm1822_vm15  ;;  %v1867_v9 = vand.u32 2147483648, %v1855_v5  ;;  %v1865_v20 = vand.u32 2147483647, %v1855_v5  ;;  %vm1861_vm6 = vweird.f32 %v1855_v5 }
 0xb16   :  { %v1818_v6 = vsub.f32 1.0, %v1817_v4  ;;  %v1845_v42 = vmul.f32 %v1844_v34, %v2554_v32 }
 0xb17   :  { %v1868_v17 = vor.u32 1.1754944e-38, %v1867_v9  ;;  %vm1866_vm8 = vcmp.eq.f32.partialorder %v1865_v20, 8.507059e+37 }
 0xb18   :  { %v1819_v10 = vmul.f32 %v2197_v2, %v1818_v6 }
 0xb1a   :  { %v1820_v12 = vadd.f32 %v2197_v2, %v1819_v10 }
 0xb1b   :  { %v2199_v40 = vpop.eup %2198 }
 0xb1c   :  { %v1824_v23 = vsel %vm1823_vm2, %v2197_v2, %v1820_v12  ;;  %v1857_v47 = vmul.f32 %v2199_v40, %v1855_v5  ;;  %vm1862_vm5 = vweird.f32 %v2199_v40 }
 0xb1d   :  { %v1829_v24 = vsel %vm1826_vm4, %v1828_v14, %v1824_v23  ;;  %vm1863_vm7 = vmor %vm1861_vm6, %vm1862_vm5 }
 0xb1e   :  { %v1830_v27 = vmul.f32 %v1829_v24, %v1805_v22  ;;  %v1858_v29 = vsub.f32 1.0, %v1857_v47 }
 0xb20   :  { %v2098_v30 = vclamps-f32 %v1830_v27, 1.0  ;;  %v1859_v35 = vmul.f32 %v2199_v40, %v1858_v29 }
 0xb22   :  { %v1873_v37 = vadd.f32 1.0, %v2098_v30  ;;  %v1860_v41 = vadd.f32 %v2199_v40, %v1859_v35 }
 0xb24   :  { %v1875_v15 = vmul.f32 %v1873_v37, %v1789_v36  ;;  %v1864_v18 = vsel %vm1863_vm7, %v2199_v40, %v1860_v41  ;;  %v1918_v37 = vld [vmem:[#allocation4 + $0xf8] sm:$0xff] }
 0xb25   :  { %v1869_v44 = vsel %vm1866_vm8, %v1868_v17, %v1864_v18  ;;  %v1921_v17 = vld [vmem:[#allocation4 + $0x108] sm:$0xff] }
 0xb26   :  { %2100 = vmatmul.msk.f32.vlgmr.msrb.gmra.mxu2 %vm54_vm0, %v1875_v15  ;;  %v1870_v45 = vmul.f32 %v1869_v44, %v1845_v42  ;;  %v1980_v44 = vld [vmem:[#allocation4 + $0x110] sm:$0xff] }
 0xb28   :  { %v2099_v46 = vclamps-f32 %v1870_v45, 1.0 }
 0xb2a   :  { %v1874_v48 = vadd.f32 1.0, %v2099_v46 }
 0xb2c   :  { %v1876_v43 = vmul.f32 %v1874_v48, %v1790_v21  ;;  %v1981_v21 = vld [vmem:[#allocation4 + $0x118] sm:$0xff] }
 0xb2e   :  { %2101 = vmatmul.msk.f32.gmra.mxu2 %vm54_vm0, %v1876_v43 }
 0xba9   :  { %v1908_v49 = vpop.f32.mrf.mxu2 }
 0xbaa   :  { %v1909_v19 = vadd.f32 %v1908_v49, %v1883_v16 }
 0xbac   :  { %v1914_v51 = vadd.f32 %v1909_v19, %v2521_v26  ;;  %v1978_v26 = vld [vmem:[#allocation2 + $0x1b8] sm:$0xff] }
 0xbad   :  { %2000 = vmatpush.msrb.mxu3 %v1978_v26 }
 0xbae   :  { %v1922_v32 = vsel %vm54_vm0, %v1914_v51, 0.0  ;;  %v1930_v52 = vmul.f32 %v1914_v51, %v1914_v51 }
 0xbaf   :  { %1923 = vadd.xlane.f32.xlu0 %v1922_v32  ;;  %2001 = vmatpush.msrb.mxu3 %v1977_v60 }
 0xbb0   :  { %v1932_v53 = vsel %vm54_vm0, %v1930_v52, 0.0 }
 0xbb1   :  { %1933 = vadd.xlane.f32.xlu1 %v1932_v53  ;;  %v1911_v13 = vpop.f32.mrf.mxu2  ;;  %2002 = vmatpush.msrb.mxu3 %v1976_v61 }
 0xbb2   :  { %v1912_v56 = vadd.f32 %v1911_v13, %v1884_v54 }
 0xbb3   :  { %2003 = vmatpush.msrb.mxu3 %v1975_v63 }
 0xbb4   :  { %v1915_v28 = vadd.f32 %v1912_v56, %v2529_v33 }
 0xbb6   :  { %v1925_v57 = vsel %vm54_vm0, %v1915_v28, 0.0  ;;  %v1931_v58 = vmul.f32 %v1915_v28, %v1915_v28 }
 0xbb7   :  { %1926 = vadd.xlane.f32.xlu2 %v1925_v57 }
 0xbb8   :  { %v1935_v59 = vsel %vm54_vm0, %v1931_v58, 0.0 }
 0xbb9   :  { %1936 = vadd.xlane.f32.xlu0 %v1935_v59 }
 0xc22   :  { %v1924_v62 = vpop.xlane.xlu0 %1923 }
 0xc23   :  { %v1928_v39 = vmul.f32 %v1924_v62, %v2310_v31 }
 0xc24   :  { %v1934_v55 = vpop.xlane.xlu1 %1933 }
 0xc25   :  { %v1940_v33 = vmul.f32 %v1928_v39, %v1928_v39  ;;  %v1938_v0 = vmul.f32 %v1934_v55, %v2310_v31  ;;  %v1944_v23 = vsub.f32 %v1914_v51, %v1928_v39 }
 0xc27   :  { %v1942_v1 = vsub.f32 %v1938_v0, %v1940_v33 }
 0xc29   :  { %v1946_v2 = vadd.f32 1e-05, %v1942_v1 }
 0xc2a   :  { %v1927_v3 = vpop.xlane.xlu2 %1926 }
 0xc2b   :  { %2200 = vrsqrt.f32 %v1946_v2  ;;  %v1929_v4 = vmul.f32 %v1927_v3, %v2310_v31  ;;  %vm1954_vm3 = vweird.f32 %v1946_v2 }
 0xc2c   :  { %v1937_v5 = vpop.xlane.xlu0 %1936 }
 0xc2d   :  { %v1941_v38 = vmul.f32 %v1929_v4, %v1929_v4  ;;  %v1939_v6 = vmul.f32 %v1937_v5, %v2310_v31  ;;  %v1920_v31 = vld [vmem:[#allocation4 + $0x100] sm:$0xff]  ;;  %v1945_v36 = vsub.f32 %v1915_v28, %v1929_v4 }
 0xc2f   :  { %v1943_v7 = vsub.f32 %v1939_v6, %v1941_v38 }
 0xc31   :  { %v2201_v50 = vpop.eup %2200  ;;  %v1947_v11 = vadd.f32 1e-05, %v1943_v7 }
 0xc32   :  { %v1949_v10 = vmul.f32 %v2201_v50, %v1946_v2  ;;  %vm1955_vm9 = vweird.f32 %v2201_v50 }
 0xc33   :  { %2202 = vrsqrt.f32 %v1947_v11  ;;  %vm1956_vm10 = vmor %vm1954_vm3, %vm1955_vm9  ;;  %vm1964_vm12 = vweird.f32 %v1947_v11 }
 0xc34   :  { %v1950_v8 = vmul.f32 %v2201_v50, %v1949_v10 }
 0xc36   :  { %v1951_v12 = vmul.f32 0.5, %v1950_v8 }
 0xc38   :  { %v1952_v14 = vsub.f32 1.5, %v1951_v12 }
 0xc39   :  { %v2203_v40 = vpop.eup %2202 }
 0xc3a   :  { %v1953_v22 = vmul.f32 %v2201_v50, %v1952_v14  ;;  %v1959_v24 = vmul.f32 %v2203_v40, %v1947_v11  ;;  %vm1965_vm11 = vweird.f32 %v2203_v40 }
 0xc3b   :  { %vm1966_vm13 = vmor %vm1964_vm12, %vm1965_vm11 }
 0xc3c   :  { %v1957_v47 = vsel %vm1956_vm10, %v2201_v50, %v1953_v22  ;;  %v1960_v29 = vmul.f32 %v2203_v40, %v1959_v24 }
 0xc3d   :  { %v1968_v27 = vmul.f32 %v1957_v47, %v1944_v23 }
 0xc3e   :  { %v1961_v9 = vmul.f32 0.5, %v1960_v29 }
 0xc3f   :  { %v1970_v30 = vmul.f32 %v1968_v27, %v1917_v25 }
 0xc40   :  { %v1962_v34 = vsub.f32 1.5, %v1961_v9 }
 0xc41   :  { %v1972_v35 = vadd.f32 %v1970_v30, %v1920_v31 }
 0xc42   :  { %v1963_v20 = vmul.f32 %v2203_v40, %v1962_v34 }
 0xc43   :  { %2102 = vmatmul.msk.f32.vlgmr.msrb.gmra.mxu3 %vm54_vm0, %v1972_v35 }
 0xc44   :  { %v1967_v41 = vsel %vm1966_vm13, %v2203_v40, %v1963_v20 }
 0xc45   :  { %v1969_v15 = vmul.f32 %v1967_v41, %v1945_v36 }
 0xc47   :  { %v1971_v42 = vmul.f32 %v1969_v15, %v1918_v37 }
 0xc49   :  { %v1973_v18 = vadd.f32 %v1971_v42, %v1921_v17 }
 0xc4b   :  { %2103 = vmatmul.msk.f32.gmra.mxu3 %vm54_vm0, %v1973_v18 }
 0xcc6   :  { %v2005_v45 = vpop.f32.mrf.mxu3 }
 0xcc7   :  { %v2006_v46 = vadd.f32 %v2005_v45, %v1980_v44 }
 0xcc9   :  { %2012 = vst.msk [vmem:[%s2585_s3] sm:$0xff] %vm2011_vm14, %v2006_v46 }
 0xcce   :  { %v2008_v48 = vpop.f32.mrf.mxu3 }
 0xccf   :  { %v2009_v43 = vadd.f32 %v2008_v48, %v1981_v21 }
 0xcd1   :  { %2013 = vst.msk [vmem:[%s2585_s3 + $0x8] sm:$0xff] %vm2011_vm14, %v2009_v43 }
 0xcd2   :  { %2018 = vsyncpa [#allocation3], 1 }
 0xcd3   :  { %2019 = vsyncpa [#allocation5], 1 }

</bundles_post_ra>
